<compile_context>
chip_gen: v6e
topology: v6e:2x2x1
jax: 0.10.0
libtpu: 0.0.40
codegen_flags: <defaults>
</compile_context>

<pallas_src>
import functools

import jax
import jax.numpy as jnp
from jax import lax
from jax.experimental import pallas as pl
from jax.experimental.pallas import tpu as pltpu


def _round_up(x, m):
    return (x + m - 1) // m * m


# ----------------------------- Pallas kernels ------------------------------

def conv_stats_kernel(x_ref, w_ref, y_ref, sum_ref, sq_ref, *,
                      KH, KW, Ho, Wo, Cin):
    """Per-image conv as KH*KW accumulated GEMMs + fused BN partial statistics.

    x_ref:   (1, Hp, Wp, Cin)   bf16  padded NHWC image
    w_ref:   (KH*KW, Cin, Cp)   bf16  per-tap weights, Cout zero-padded to Cp
    y_ref:   (Ho*Wo, Cp)        f32   conv output rows for this image
    sum_ref: (1, 1, Cp)         f32   per-image   sum_m y[m, c]
    sq_ref:  (1, 1, Cp)         f32   per-image   sum_m y[m, c]^2
    """
    x = x_ref[0]                                          # (Hp, Wp, Cin) bf16
    w_all = w_ref[...]                                    # (KH*KW, Cin, Cp) bf16
    cp = w_all.shape[-1]
    acc = jnp.zeros((Ho * Wo, cp), dtype=jnp.float32)
    for dh in range(KH):                                  # static unroll over taps
        for dw in range(KW):
            patch = x[dh:dh + Ho, dw:dw + Wo, :]          # (Ho, Wo, Cin) shifted window
            patch = patch.reshape(Ho * Wo, Cin)           # collapse leading dims
            acc = acc + jnp.dot(patch, w_all[dh * KW + dw],
                                preferred_element_type=jnp.float32)
    y_ref[...] = acc
    # BN partial stats fused into the GEMM epilogue (one pass: sum & sum-of-squares).
    sum_ref[0, :, :] = jnp.sum(acc, axis=0, keepdims=True)
    sq_ref[0, :, :] = jnp.sum(acc * acc, axis=0, keepdims=True)


def bn_gelu_kernel(y_ref, sum_ref, sq_ref, gamma_ref, beta_ref, o_ref, *,
                   inv_count):
    """Normalize with batch stats (biased var, eps=1e-5) + exact-erf GELU.

    y_ref:     (tm, Cp)    f32  conv-output tile
    sum_ref:   (N, 1, Cp)  f32  per-image channel sums         (full, VMEM resident)
    sq_ref:    (N, 1, Cp)  f32  per-image channel sum-squares  (full, VMEM resident)
    gamma_ref: (1, Cp)     f32
    beta_ref:  (1, Cp)     f32
    o_ref:     (tm, Cp)    f32
    """
    mean = jnp.sum(sum_ref[...], axis=0) * inv_count      # (1, Cp)
    ex2 = jnp.sum(sq_ref[...], axis=0) * inv_count        # (1, Cp)
    var = ex2 - mean * mean                               # biased variance (train mode)
    inv = lax.rsqrt(var + 1e-5)
    scale = inv * gamma_ref[...]
    shift = beta_ref[...] - mean * scale
    z = y_ref[...] * scale + shift
    o_ref[...] = jax.nn.gelu(z, approximate=False)        # nn.GELU() default = erf


# ------------------------------ JAX wrapper --------------------------------

def conv_bn_gelu(x_nchw, w_oihw, gamma, beta, *, padding=1):
    N, Cin, H, W = x_nchw.shape
    Cout, Cin_w, KH, KW = w_oihw.shape
    assert Cin_w == Cin
    Ho = H + 2 * padding - KH + 1
    Wo = W + 2 * padding - KW + 1
    Hp = H + 2 * padding
    Wp = W + 2 * padding
    M = N * Ho * Wo
    Cp = _round_up(Cout, 128)                 # lane-dense channel dimension

    # --- glue: NCHW -> padded NHWC (bf16 for the MXU), weights -> per-tap ----
    x = jnp.transpose(x_nchw, (0, 2, 3, 1))
    xp = jnp.pad(x, ((0, 0), (padding, padding), (padding, padding), (0, 0)))
    xp = xp.astype(jnp.bfloat16)                                  # (N, Hp, Wp, Cin)

    # PyTorch (Cout, Cin, KH, KW) -> (KH*KW, Cin, Cp), padded channels are zero.
    w_taps = jnp.transpose(w_oihw, (2, 3, 1, 0)).reshape(KH * KW, Cin, Cout)
    w_taps = jnp.pad(w_taps, ((0, 0), (0, 0), (0, Cp - Cout)))
    w_taps = w_taps.astype(jnp.bfloat16)

    gamma_p = jnp.pad(gamma.astype(jnp.float32), (0, Cp - Cout),
                      constant_values=1.0).reshape(1, Cp)
    beta_p = jnp.pad(beta.astype(jnp.float32), (0, Cp - Cout)).reshape(1, Cp)

    # --- kernel 1: conv (shifted-tap GEMMs) + fused BN partial stats ---------
    kern1 = functools.partial(conv_stats_kernel,
                              KH=KH, KW=KW, Ho=Ho, Wo=Wo, Cin=Cin)
    flops1 = 2 * M * KH * KW * Cin * Cp
    bytes1 = xp.size * 2 + w_taps.size * 2 + M * Cp * 4 + 2 * N * Cp * 4
    conv_out, sums, sqs = pl.pallas_call(
        kern1,
        out_shape=(jax.ShapeDtypeStruct((M, Cp), jnp.float32),
                   jax.ShapeDtypeStruct((N, 1, Cp), jnp.float32),
                   jax.ShapeDtypeStruct((N, 1, Cp), jnp.float32)),
        grid_spec=pltpu.PrefetchScalarGridSpec(
            num_scalar_prefetch=0,
            grid=(N,),
            in_specs=[pl.BlockSpec((1, Hp, Wp, Cin), lambda n: (n, 0, 0, 0)),
                      pl.BlockSpec((KH * KW, Cin, Cp), lambda n: (0, 0, 0))],
            out_specs=[pl.BlockSpec((Ho * Wo, Cp), lambda n: (n, 0)),
                       pl.BlockSpec((1, 1, Cp), lambda n: (n, 0, 0)),
                       pl.BlockSpec((1, 1, Cp), lambda n: (n, 0, 0))]),
        compiler_params=pltpu.CompilerParams(
            dimension_semantics=("parallel",)),
        cost_estimate=pl.CostEstimate(flops=flops1, transcendentals=0,
                                      bytes_accessed=bytes1),
    )(xp, w_taps)

    # --- kernel 2: normalize + GELU, tiled over M, megacore-parallel ---------
    tm = M
    for cand in (1024, 512, 256, 128, 64, 32, 16, 8):
        if M % cand == 0 and M // cand >= 2:
            tm = cand
            break
    kern2 = functools.partial(bn_gelu_kernel, inv_count=1.0 / M)
    flops2 = 10 * M * Cp
    bytes2 = 2 * M * Cp * 4 + 2 * N * Cp * 4 + 2 * Cp * 4
    out_flat = pl.pallas_call(
        kern2,
        out_shape=jax.ShapeDtypeStruct((M, Cp), jnp.float32),
        grid_spec=pltpu.PrefetchScalarGridSpec(
            num_scalar_prefetch=0,
            grid=(M // tm,),
            in_specs=[pl.BlockSpec((tm, Cp), lambda i: (i, 0)),
                      pl.BlockSpec((N, 1, Cp), lambda i: (0, 0, 0)),
                      pl.BlockSpec((N, 1, Cp), lambda i: (0, 0, 0)),
                      pl.BlockSpec((1, Cp), lambda i: (0, 0)),
                      pl.BlockSpec((1, Cp), lambda i: (0, 0))],
            out_specs=pl.BlockSpec((tm, Cp), lambda i: (i, 0))),
        compiler_params=pltpu.CompilerParams(
            dimension_semantics=("parallel",)),
        cost_estimate=pl.CostEstimate(flops=flops2, transcendentals=M * Cp,
                                      bytes_accessed=bytes2),
    )(conv_out, sums, sqs, gamma_p, beta_p)

    # --- glue: strip channel padding, back to NCHW ---------------------------
    out = out_flat[:, :Cout].reshape(N, Ho, Wo, Cout)
    return jnp.transpose(out, (0, 3, 1, 2))


# --------------------------- pure-JAX reference ----------------------------

def reference(x_nchw, w_oihw, gamma, beta, *, padding=1):
    y = lax.conv_general_dilated(
        x_nchw.astype(jnp.float32), w_oihw.astype(jnp.float32),
        window_strides=(1, 1), padding=[(padding, padding)] * 2,
        dimension_numbers=("NCHW", "OIHW", "NCHW"))
    mean = jnp.mean(y, axis=(0, 2, 3), keepdims=True)
    var = jnp.mean((y - mean) ** 2, axis=(0, 2, 3), keepdims=True)
    z = (y - mean) * lax.rsqrt(var + 1e-5) * gamma.reshape(1, -1, 1, 1) \
        + beta.reshape(1, -1, 1, 1)
    return jax.nn.gelu(z, approximate=False)


# --------------------------------- main -------------------------------------

if __name__ == "__main__":
    key = jax.random.PRNGKey(0)
    k_x, k_w, k_g, k_b = jax.random.split(key, 4)

    N, Cin, H, W = 2, 4, 16, 16          # input  (PyTorch NCHW)
    Cout, KH, KW, padding = 8, 3, 3, 1   # Conv(in_feat=4, out_feat=8, kernel=3)

    x = jax.random.normal(k_x, (N, Cin, H, W), dtype=jnp.float32)
    w = 0.1 * jax.random.normal(k_w, (Cout, Cin, KH, KW), dtype=jnp.float32)
    gamma = 1.0 + 0.1 * jax.random.normal(k_g, (Cout,), dtype=jnp.float32)
    beta = 0.1 * jax.random.normal(k_b, (Cout,), dtype=jnp.float32)

    out = conv_bn_gelu(x, w, gamma, beta, padding=padding)
    out = jax.block_until_ready(out)
    assert out.shape == (N, Cout, H, W)

    # Tight check vs a reference fed the same bf16-rounded MXU inputs.
    ref_bf16 = jax.block_until_ready(reference(
        x.astype(jnp.bfloat16).astype(jnp.float32),
        w.astype(jnp.bfloat16).astype(jnp.float32),
        gamma, beta, padding=padding))
    assert jnp.max(jnp.abs(out - ref_bf16)) < 1e-3, "mismatch vs bf16-input reference"

    # Loose check vs the full-precision reference (bf16 MXU input rounding).
    ref_full = jax.block_until_ready(reference(x, w, gamma, beta, padding=padding))
    assert jnp.max(jnp.abs(out - ref_full)) < 5e-2, "mismatch vs f32 reference"

    print("KERNEL_OK")
</pallas_src>

<mosaic_0001>
module attributes {stable_mosaic.version = 11 : i64} {
  func.func @conv_stats_kernel(%arg0: i32, %arg1: memref<1x18x18x4xbf16, #tpu.memory_space<vmem>>, %arg2: memref<9x4x128xbf16, #tpu.memory_space<vmem>>, %arg3: memref<256x128xf32, #tpu.memory_space<vmem>>, %arg4: memref<1x1x128xf32, #tpu.memory_space<vmem>>, %arg5: memref<1x1x128xf32, #tpu.memory_space<vmem>>) attributes {dimension_semantics = [#tpu.dimension_semantics<parallel>], iteration_bounds = array<i64: 2>, scalar_prefetch = 0 : i64, scratch_operands = 0 : i64, tpu.core_type = #tpu.core_type<tc>, window_params = [{transform_indices = @transform_0, window_bounds = array<i64: 1, 18, 18, 4>}, {pipeline_mode = #tpu.pipeline_mode<synchronous>, transform_indices = @transform_1, window_bounds = array<i64: 9, 4, 128>}, {transform_indices = @transform_2, window_bounds = array<i64: 256, 128>}, {transform_indices = @transform_3, window_bounds = array<i64: 1, 1, 128>}, {transform_indices = @transform_4, window_bounds = array<i64: 1, 1, 128>}]} {
    %c0 = arith.constant 0 : index
    %c0_0 = arith.constant 0 : index
    %c0_1 = arith.constant 0 : index
    %c0_2 = arith.constant 0 : index
    %0 = vector.load %arg1[%c0, %c0_0, %c0_1, %c0_2] : memref<1x18x18x4xbf16, #tpu.memory_space<vmem>>, vector<1x18x18x4xbf16>
    %1 = vector.shape_cast %0 : vector<1x18x18x4xbf16> to vector<18x18x4xbf16>
    %c0_3 = arith.constant 0 : index
    %c0_4 = arith.constant 0 : index
    %c0_5 = arith.constant 0 : index
    %2 = vector.load %arg2[%c0_3, %c0_4, %c0_5] : memref<9x4x128xbf16, #tpu.memory_space<vmem>>, vector<9x4x128xbf16>
    %cst = arith.constant 0.000000e+00 : f32
    %3 = vector.broadcast %cst : f32 to vector<256x128xf32>
    %4 = vector.extract_strided_slice %1 {offsets = [0, 0, 0], sizes = [16, 16, 4], strides = [1, 1, 1]} : vector<18x18x4xbf16> to vector<16x16x4xbf16>
    %5 = vector.shape_cast %4 : vector<16x16x4xbf16> to vector<256x4xbf16>
    %6 = vector.extract_strided_slice %2 {offsets = [0, 0, 0], sizes = [1, 4, 128], strides = [1, 1, 1]} : vector<9x4x128xbf16> to vector<1x4x128xbf16>
    %7 = vector.shape_cast %6 : vector<1x4x128xbf16> to vector<4x128xbf16>
    %cst_6 = arith.constant dense<0.000000e+00> : vector<256x128xf32>
    %8 = tpu.matmul %5, %7, %cst_6 {dimension_numbers = #tpu.dot_dimension_numbers<[1], [0], [0], [1], [0, 0, 1, 1], [], []>} : vector<256x4xbf16>, vector<4x128xbf16>, vector<256x128xf32> -> vector<256x128xf32>
    %9 = arith.addf %3, %8 : vector<256x128xf32>
    %10 = vector.extract_strided_slice %1 {offsets = [0, 1, 0], sizes = [16, 16, 4], strides = [1, 1, 1]} : vector<18x18x4xbf16> to vector<16x16x4xbf16>
    %11 = vector.shape_cast %10 : vector<16x16x4xbf16> to vector<256x4xbf16>
    %12 = vector.extract_strided_slice %2 {offsets = [1, 0, 0], sizes = [1, 4, 128], strides = [1, 1, 1]} : vector<9x4x128xbf16> to vector<1x4x128xbf16>
    %13 = vector.shape_cast %12 : vector<1x4x128xbf16> to vector<4x128xbf16>
    %cst_7 = arith.constant dense<0.000000e+00> : vector<256x128xf32>
    %14 = tpu.matmul %11, %13, %cst_7 {dimension_numbers = #tpu.dot_dimension_numbers<[1], [0], [0], [1], [0, 0, 1, 1], [], []>} : vector<256x4xbf16>, vector<4x128xbf16>, vector<256x128xf32> -> vector<256x128xf32>
    %15 = arith.addf %9, %14 : vector<256x128xf32>
    %16 = vector.extract_strided_slice %1 {offsets = [0, 2, 0], sizes = [16, 16, 4], strides = [1, 1, 1]} : vector<18x18x4xbf16> to vector<16x16x4xbf16>
    %17 = vector.shape_cast %16 : vector<16x16x4xbf16> to vector<256x4xbf16>
    %18 = vector.extract_strided_slice %2 {offsets = [2, 0, 0], sizes = [1, 4, 128], strides = [1, 1, 1]} : vector<9x4x128xbf16> to vector<1x4x128xbf16>
    %19 = vector.shape_cast %18 : vector<1x4x128xbf16> to vector<4x128xbf16>
    %cst_8 = arith.constant dense<0.000000e+00> : vector<256x128xf32>
    %20 = tpu.matmul %17, %19, %cst_8 {dimension_numbers = #tpu.dot_dimension_numbers<[1], [0], [0], [1], [0, 0, 1, 1], [], []>} : vector<256x4xbf16>, vector<4x128xbf16>, vector<256x128xf32> -> vector<256x128xf32>
    %21 = arith.addf %15, %20 : vector<256x128xf32>
    %22 = vector.extract_strided_slice %1 {offsets = [1, 0, 0], sizes = [16, 16, 4], strides = [1, 1, 1]} : vector<18x18x4xbf16> to vector<16x16x4xbf16>
    %23 = vector.shape_cast %22 : vector<16x16x4xbf16> to vector<256x4xbf16>
    %24 = vector.extract_strided_slice %2 {offsets = [3, 0, 0], sizes = [1, 4, 128], strides = [1, 1, 1]} : vector<9x4x128xbf16> to vector<1x4x128xbf16>
    %25 = vector.shape_cast %24 : vector<1x4x128xbf16> to vector<4x128xbf16>
    %cst_9 = arith.constant dense<0.000000e+00> : vector<256x128xf32>
    %26 = tpu.matmul %23, %25, %cst_9 {dimension_numbers = #tpu.dot_dimension_numbers<[1], [0], [0], [1], [0, 0, 1, 1], [], []>} : vector<256x4xbf16>, vector<4x128xbf16>, vector<256x128xf32> -> vector<256x128xf32>
    %27 = arith.addf %21, %26 : vector<256x128xf32>
    %28 = vector.extract_strided_slice %1 {offsets = [1, 1, 0], sizes = [16, 16, 4], strides = [1, 1, 1]} : vector<18x18x4xbf16> to vector<16x16x4xbf16>
    %29 = vector.shape_cast %28 : vector<16x16x4xbf16> to vector<256x4xbf16>
    %30 = vector.extract_strided_slice %2 {offsets = [4, 0, 0], sizes = [1, 4, 128], strides = [1, 1, 1]} : vector<9x4x128xbf16> to vector<1x4x128xbf16>
    %31 = vector.shape_cast %30 : vector<1x4x128xbf16> to vector<4x128xbf16>
    %cst_10 = arith.constant dense<0.000000e+00> : vector<256x128xf32>
    %32 = tpu.matmul %29, %31, %cst_10 {dimension_numbers = #tpu.dot_dimension_numbers<[1], [0], [0], [1], [0, 0, 1, 1], [], []>} : vector<256x4xbf16>, vector<4x128xbf16>, vector<256x128xf32> -> vector<256x128xf32>
    %33 = arith.addf %27, %32 : vector<256x128xf32>
    %34 = vector.extract_strided_slice %1 {offsets = [1, 2, 0], sizes = [16, 16, 4], strides = [1, 1, 1]} : vector<18x18x4xbf16> to vector<16x16x4xbf16>
    %35 = vector.shape_cast %34 : vector<16x16x4xbf16> to vector<256x4xbf16>
    %36 = vector.extract_strided_slice %2 {offsets = [5, 0, 0], sizes = [1, 4, 128], strides = [1, 1, 1]} : vector<9x4x128xbf16> to vector<1x4x128xbf16>
    %37 = vector.shape_cast %36 : vector<1x4x128xbf16> to vector<4x128xbf16>
    %cst_11 = arith.constant dense<0.000000e+00> : vector<256x128xf32>
    %38 = tpu.matmul %35, %37, %cst_11 {dimension_numbers = #tpu.dot_dimension_numbers<[1], [0], [0], [1], [0, 0, 1, 1], [], []>} : vector<256x4xbf16>, vector<4x128xbf16>, vector<256x128xf32> -> vector<256x128xf32>
    %39 = arith.addf %33, %38 : vector<256x128xf32>
    %40 = vector.extract_strided_slice %1 {offsets = [2, 0, 0], sizes = [16, 16, 4], strides = [1, 1, 1]} : vector<18x18x4xbf16> to vector<16x16x4xbf16>
    %41 = vector.shape_cast %40 : vector<16x16x4xbf16> to vector<256x4xbf16>
    %42 = vector.extract_strided_slice %2 {offsets = [6, 0, 0], sizes = [1, 4, 128], strides = [1, 1, 1]} : vector<9x4x128xbf16> to vector<1x4x128xbf16>
    %43 = vector.shape_cast %42 : vector<1x4x128xbf16> to vector<4x128xbf16>
    %cst_12 = arith.constant dense<0.000000e+00> : vector<256x128xf32>
    %44 = tpu.matmul %41, %43, %cst_12 {dimension_numbers = #tpu.dot_dimension_numbers<[1], [0], [0], [1], [0, 0, 1, 1], [], []>} : vector<256x4xbf16>, vector<4x128xbf16>, vector<256x128xf32> -> vector<256x128xf32>
    %45 = arith.addf %39, %44 : vector<256x128xf32>
    %46 = vector.extract_strided_slice %1 {offsets = [2, 1, 0], sizes = [16, 16, 4], strides = [1, 1, 1]} : vector<18x18x4xbf16> to vector<16x16x4xbf16>
    %47 = vector.shape_cast %46 : vector<16x16x4xbf16> to vector<256x4xbf16>
    %48 = vector.extract_strided_slice %2 {offsets = [7, 0, 0], sizes = [1, 4, 128], strides = [1, 1, 1]} : vector<9x4x128xbf16> to vector<1x4x128xbf16>
    %49 = vector.shape_cast %48 : vector<1x4x128xbf16> to vector<4x128xbf16>
    %cst_13 = arith.constant dense<0.000000e+00> : vector<256x128xf32>
    %50 = tpu.matmul %47, %49, %cst_13 {dimension_numbers = #tpu.dot_dimension_numbers<[1], [0], [0], [1], [0, 0, 1, 1], [], []>} : vector<256x4xbf16>, vector<4x128xbf16>, vector<256x128xf32> -> vector<256x128xf32>
    %51 = arith.addf %45, %50 : vector<256x128xf32>
    %52 = vector.extract_strided_slice %1 {offsets = [2, 2, 0], sizes = [16, 16, 4], strides = [1, 1, 1]} : vector<18x18x4xbf16> to vector<16x16x4xbf16>
    %53 = vector.shape_cast %52 : vector<16x16x4xbf16> to vector<256x4xbf16>
    %54 = vector.extract_strided_slice %2 {offsets = [8, 0, 0], sizes = [1, 4, 128], strides = [1, 1, 1]} : vector<9x4x128xbf16> to vector<1x4x128xbf16>
    %55 = vector.shape_cast %54 : vector<1x4x128xbf16> to vector<4x128xbf16>
    %cst_14 = arith.constant dense<0.000000e+00> : vector<256x128xf32>
    %56 = tpu.matmul %53, %55, %cst_14 {dimension_numbers = #tpu.dot_dimension_numbers<[1], [0], [0], [1], [0, 0, 1, 1], [], []>} : vector<256x4xbf16>, vector<4x128xbf16>, vector<256x128xf32> -> vector<256x128xf32>
    %57 = arith.addf %51, %56 : vector<256x128xf32>
    %c0_15 = arith.constant 0 : index
    %c0_16 = arith.constant 0 : index
    %58 = vector.load %arg3[%c0_15, %c0_16] : memref<256x128xf32, #tpu.memory_space<vmem>>, vector<256x128xf32>
    tpu.vector_store %arg3[%c0_15, %c0_16], %57 {strides = array<i32>} : memref<256x128xf32, #tpu.memory_space<vmem>>, vector<256x128xf32>,
    %cst_17 = arith.constant dense<0.000000e+00> : vector<128xf32>
    %59 = vector.multi_reduction <add>, %57, %cst_17 [0] : vector<256x128xf32> to vector<128xf32>
    %60 = vector.shape_cast %59 : vector<128xf32> to vector<1x128xf32>
    %c0_18 = arith.constant 0 : index
    %c0_19 = arith.constant 0 : index
    %c0_20 = arith.constant 0 : index
    %61 = vector.load %arg4[%c0_18, %c0_19, %c0_20] : memref<1x1x128xf32, #tpu.memory_space<vmem>>, vector<1x1x128xf32>
    %62 = vector.shape_cast %61 : vector<1x1x128xf32> to vector<1x128xf32>
    %63 = vector.shape_cast %60 : vector<1x128xf32> to vector<1x1x128xf32>
    tpu.vector_store %arg4[%c0_18, %c0_19, %c0_20], %63 {strides = array<i32>} : memref<1x1x128xf32, #tpu.memory_space<vmem>>, vector<1x1x128xf32>,
    %64 = arith.mulf %57, %57 : vector<256x128xf32>
    %cst_21 = arith.constant dense<0.000000e+00> : vector<128xf32>
    %65 = vector.multi_reduction <add>, %64, %cst_21 [0] : vector<256x128xf32> to vector<128xf32>
    %66 = vector.shape_cast %65 : vector<128xf32> to vector<1x128xf32>
    %c0_22 = arith.constant 0 : index
    %c0_23 = arith.constant 0 : index
    %c0_24 = arith.constant 0 : index
    %67 = vector.load %arg5[%c0_22, %c0_23, %c0_24] : memref<1x1x128xf32, #tpu.memory_space<vmem>>, vector<1x1x128xf32>
    %68 = vector.shape_cast %67 : vector<1x1x128xf32> to vector<1x128xf32>
    %69 = vector.shape_cast %66 : vector<1x128xf32> to vector<1x1x128xf32>
    tpu.vector_store %arg5[%c0_22, %c0_23, %c0_24], %69 {strides = array<i32>} : memref<1x1x128xf32, #tpu.memory_space<vmem>>, vector<1x1x128xf32>,
    return
  }
  func.func @transform_0(%arg0: i32) -> (i32, i32, i32, i32) {
    %c0_i32 = arith.constant 0 : i32
    %c0_i32_0 = arith.constant 0 : i32
    %c0_i32_1 = arith.constant 0 : i32
    %c0_i32_2 = arith.constant 0 : i32
    return %arg0, %c0_i32, %c0_i32_0, %c0_i32_1 : i32, i32, i32, i32
  }
  func.func @transform_1(%arg0: i32) -> (i32, i32, i32) {
    %c0_i32 = arith.constant 0 : i32
    %c0_i32_0 = arith.constant 0 : i32
    %c0_i32_1 = arith.constant 0 : i32
    %c0_i32_2 = arith.constant 0 : i32
    return %c0_i32, %c0_i32_0, %c0_i32_1 : i32, i32, i32
  }
  func.func @transform_2(%arg0: i32) -> (i32, i32) {
    %c0_i32 = arith.constant 0 : i32
    %c0_i32_0 = arith.constant 0 : i32
    return %arg0, %c0_i32 : i32, i32
  }
  func.func @transform_3(%arg0: i32) -> (i32, i32, i32) {
    %c0_i32 = arith.constant 0 : i32
    %c0_i32_0 = arith.constant 0 : i32
    %c0_i32_1 = arith.constant 0 : i32
    return %arg0, %c0_i32, %c0_i32_0 : i32, i32, i32
  }
  func.func @transform_4(%arg0: i32) -> (i32, i32, i32) {
    %c0_i32 = arith.constant 0 : i32
    %c0_i32_0 = arith.constant 0 : i32
    %c0_i32_1 = arith.constant 0 : i32
    return %arg0, %c0_i32, %c0_i32_0 : i32, i32, i32
  }
}

</mosaic_0001>

<bundles_post_ra>
// kernel: tpu_custom_call.1
= control target key start
LH: loop header
LB: loop body
LE: loop exit
PB: predicated region body
PF: predicated region fallthrough
CT: control target
= control target key end

     0   :  { %10 = vsyncpa [#allocation3], 0  ;;  %s5772_s0 = inlined_call_operand.vmem [shape: bf16[2,18,18,4], index: 0, kind: input, shape index: {}]   ;;  %s5773_s1 = inlined_call_operand.vmem [shape: bf16[9,4,128], index: 1, kind: input, shape index: {}]   ;;  %s5774_s2 = inlined_call_operand.hbm [shape: f32[512,128], index: 2, kind: output, shape index: {0}]   ;;  %s5775_s3 = inlined_call_operand.hbm [shape: f32[2,1,128], index: 3, kind: output, shape index: {1}]   ;;  %s5776_s4 = inlined_call_operand.hbm [shape: f32[2,1,128], index: 4, kind: output, shape index: {2}]  }
   0x1   :  { %12 = vsyncpa [#allocation3 + $0x1], 0 }
   0x2   :  { %13 = vsyncpa [#allocation5], 0 }
   0x3   :  { %15 = vsyncpa [#allocation5 + $0x1], 0  ;;  %s4143_s15 = smov 0   ;;  %s4145_s16 = smov 0  }
   0x4   :  { %s4147_s17 = smov 0   ;;  %s4149_s18 = smov 0  }
   0x5 LB: > { %s4164_s19 = sadd.s32 4294967295, %s4111_s18   ;;  %s3224_s20 = sadd.s32 4294967294, %s4111_s18   ;;  %s4111_s18 = sphi %s4149_s18, %s5986_s18   ;;  %s4107_s17 = sphi %s4147_s17, %s5985_s17   ;;  %s4103_s16 = sphi %s4145_s16, %s5984_s16   ;;  %s4099_s15 = sphi %s4143_s15, %s5983_s15  }
   0x6   : > { %s4168_s21 = sadd.s32 1, %s4111_s18   ;;  %s75_s22 = sadd.s32 1, %s4107_s17 }
   0x7   : > { %s72_s23 = ssub.s32 %s4111_s18, %s4168_s21  ;;  %p85_p0 = scmp.ne.s32.totalorder %s4107_s17, %s4103_s16 }
   0x8   : > { %p73_p1 = scmp.eq.s32.totalorder %s72_s23, 0  ;;  %p86_p2 = scmp.eq.s32.totalorder %s4164_s19, 1 }
   0x9   : > { %p91_p3 = scmp.ne.s32.totalorder %s4103_s16, %s4099_s15  ;;  %p92_p4 = scmp.eq.s32.totalorder %s3224_s20, 1 }
   0xa   : > { %s4181_s24 = scalar_select %p73_p1, %s4107_s17, %s75_s22  }
   0xb   : > { %p4183_p5 = por %p86_p2, %p85_p0  ;;  %p4187_p6 = por %p92_p4, %p91_p3 }
   0xc   : > { %p3227_p7 = scmp.ge.s32.totalorder %s4111_s18, 1  ;;  %p173_p8 = scmp.lt.s32.totalorder %s4111_s18, 3 }
   0xe   : > { %p174_p9 = pnand %p3227_p7, %p173_p8 }
  0x10   : > { %177 = sbr.rel (%p174_p9) target bundleno = 625 (0x271), region = 28 }
  0x15   : > { %v269_v0 = vld [vmem:[%s5773_s1 + $0x2] sm:$0x3]  ;;  %vm761_vm0 = vcmask 1041408   ;;  %p207_p10 = scmp.lt.s32.totalorder %s4164_s19, 1  ;;  %v268_v2 = vld [vmem:[%s5773_s1] sm:$0x3] }
  0x16   : > { %3916 = vmatprep.subr.msk.bf16.mxu1 %vm761_vm0, %v269_v0  ;;  %3915 = vmatprep.subr.msk.bf16.mxu0 %vm761_vm0, %v269_v0  ;;  %v763_v1 = vsel %vm761_vm0, %v269_v0, 0  ;;  %v270_v3 = vld [vmem:[%s5773_s1 + $0x4] sm:$0x3]  ;;  %vm277_vm1 = vsmask.f32 3328  ;;  %v4215_v4 = vsel %vm761_vm0, %v268_v2, 0 }
  0x17   : > { %3914 = vmatpush3.bf16.msra.mxu1 %v763_v1  ;;  %3608 = vmatpush3.bf16.msra.mxu0 %v763_v1  ;;  %s208_s5 = scalar_select %p207_p10, %s4164_s19, 1  ;;  %vm278_vm2 = vsmask.f32 7440  ;;  %v4218_v5 = vsel %vm761_vm0, %v270_v3, 0  ;;  %vm712_vm3 = vcmask 31744   ;;  %v5822_v32 = vmov 0 }
  0x18   : > { %3917 = vmatprep.subr.msk.bf16.mxu1 %vm761_vm0, %v268_v2  ;;  %3918 = vmatprep.subr.msk.bf16.mxu0 %vm761_vm0, %v270_v3  ;;  %vm4257_vm4 = vmor %vm277_vm1, %vm278_vm2  ;;  %vm1234_vm5 = vcmask 1042432   ;;  %vm1235_vm6 = vcmask 1046532   ;;  %s4113_s28 = smov [#allocation2]  }
  0x19   : > { %s3925_s8 = smul.u32 216, %s208_s5  ;;  %v5823_v32 = vsel %vm4257_vm4, 4294967295, %v5822_v32  ;;  %vm4580_vm7 = vmor %vm1234_vm5, %vm1235_vm6  ;;  %s3999_s29 = sshll.u32 %s4113_s28, 4  ;;  %s4000_s29 = int_to_ptr.vmem [resolvable:$false] %s3999_s29 }
  0x1a   : > { %5824 = vst [vmem:[#allocation9_spill] sm:$0xff] %v5823_v32  ;;  %s4001_s30 = scalar_lea.vmem %s4000_s29, 8192 }
  0x1b   : > { %s4212_s11 = scalar_lea.vmem %s5772_s0, %s3925_s8  ;;  %s5523_s8 = sand.u32 1, %s4103_s16  }
  0x1c   : > { %v4221_v6 = vld [vmem:[%s4212_s11] sm:$0xf]  ;;  %v4224_v7 = vld [vmem:[%s4212_s11 + $0x4] sm:$0xf]  ;;  %v4227_v8 = vld [vmem:[%s4212_s11 + $0x8] sm:$0x1] }
  0x1d   : > { %v281_v9 = vshrl.u32 %v4221_v6, 16  ;;  %v284_v10 = vshll.u32 %v4221_v6, 16  ;;  %v290_v11 = vshll.u32 %v4224_v7, 16  ;;  %v294_v12 = vshrl.u32 %v4224_v7, 16  ;;  %v4234_v13 = vld [vmem:[%s4212_s11 + $0x60] sm:$0xf] }
  0x1e   : > { %v300_v14 = vshll.u32 %v4227_v8, 16  ;;  %v4239_v16 = vld [vmem:[%s4212_s11 + $0x64] sm:$0xf]  ;;  %v4242_v17 = vld [vmem:[%s4212_s11 + $0x68] sm:$0x1]  ;;  %v473_v23 = vshrl.u32 %v4234_v13, 16 }
  0x1f   : > { %v283_v18 = vrot.slane %v281_v9, 4  ;;  %v286_v19 = vrot.slane %v284_v10, 5  ;;  %v292_v20 = vrot.slane %v290_v11, 5  ;;  %v296_v21 = vrot.slane %v294_v12, 4  ;;  %v4250_v30 = vld [vmem:[%s4212_s11 + $0xc] sm:$0xf] }
  0x20   : > { %v302_v22 = vrot.slane %v300_v14, 5  ;;  %v476_v24 = vshll.u32 %v4234_v13, 16  ;;  %v482_v25 = vshll.u32 %v4239_v16, 16  ;;  %v486_v28 = vshrl.u32 %v4239_v16, 16  ;;  %v4253_v31 = vld [vmem:[%s4212_s11 + $0x10] sm:$0xf] }
  0x21   : > { %v287_v26 = vor.u32 %v286_v19, %v283_v18  ;;  %v297_v27 = vor.u32 %v296_v21, %v292_v20  ;;  %v492_v29 = vshll.u32 %v4242_v17, 16  ;;  %v475_v33 = vrot.slane %v473_v23, 4  ;;  %v4264_v42 = vld [vmem:[%s4212_s11 + $0x14] sm:$0x1]  ;;  %v4275_v54 = vld [vmem:[%s4212_s11 + $0x6c] sm:$0xf] }
  0x22   : > { %v478_v34 = vrot.slane %v476_v24, 5  ;;  %v484_v35 = vrot.slane %v482_v25, 5  ;;  %v488_v39 = vrot.slane %v486_v28, 4  ;;  %v305_v43 = vshrl.u32 %v4250_v30, 16  ;;  %5825 = vst [vmem:[#allocation10_spill] sm:$0xff] %v4275_v54  ;;  %s3228_s9 = sshll.u32 %s5523_s8, 8 }
  0x23   : > { %v288_v37 = vrot.slane %v287_v26, 4  ;;  %v298_v38 = vrot.slane %v297_v27, 4  ;;  %v494_v40 = vrot.slane %v492_v29, 5  ;;  %v308_v44 = vshll.u32 %v4250_v30, 16  ;;  %v4279_v59 = vld [vmem:[%s4212_s11 + $0x70] sm:$0xf] }
  0x24   : > { %v479_v41 = vor.u32 %v478_v34, %v475_v33  ;;  %v314_v45 = vshll.u32 %v4253_v31, 16  ;;  %v489_v48 = vor.u32 %v488_v39, %v484_v35  ;;  %v318_v49 = vshrl.u32 %v4253_v31, 16  ;;  %v4287_v0 = vld [vmem:[%s4212_s11 + $0x74] sm:$0x1]  ;;  %v4293_v10 = vld [vmem:[%s4212_s11 + $0x18] sm:$0xf] }
  0x25   : > { %v293_v46 = vsel %vm4257_vm4, %v288_v37, %v292_v20  ;;  %v303_v47 = vsel %vm4257_vm4, %v298_v38, %v302_v22  ;;  %v307_v52 = vrot.slane %v305_v43, 4  ;;  %v310_v53 = vrot.slane %v308_v44, 5  ;;  %5826 = vst [vmem:[#allocation11_spill] sm:$0xff] %v4287_v0  ;;  %v4302_v23 = vld [vmem:[%s4212_s11 + $0x1c] sm:$0xf]  ;;  %s5541_s10 = scalar_lea.vmem [#allocation2], %s3228_s9 }
  0x26   : > { %v3230_v50 = vcombine.low %v293_v46, %v303_v47  ;;  %v480_v51 = vrot.slane %v479_v41, 4  ;;  %v490_v55 = vrot.slane %v489_v48, 4  ;;  %v316_v56 = vrot.slane %v314_v45, 5  ;;  %v4309_v27 = vld [vmem:[%s4212_s11 + $0x20] sm:$0x1]  ;;  %s3083_s12 = sshll.u32 %s5541_s10, 4  ;;  %s5660_s12 = int_to_ptr.vmem [resolvable:$true] %s3083_s12 }
  0x27   : > { %v320_v57 = vrot.slane %v318_v49, 4  ;;  %v324_v58 = vshll.u32 %v4264_v42, 16  ;;  %v311_v61 = vor.u32 %v310_v53, %v307_v52  ;;  %v497_v9 = vshrl.u32 %v4275_v54, 16  ;;  %v4316_v37 = vld [vmem:[%s4212_s11 + $0x78] sm:$0xf]  ;;  %s3062_s23 = scalar_lea.sflag [#allocation3], %s5523_s8  ;;  %p4002_p0 = scmp.lt.s32.totalorder %s5660_s12, %s4000_s29 }
  0x28   : > { %3609 = vmatprep.mubr.msk.bf16.mxu0 %vm712_vm3, %v3230_v50  ;;  %v485_v60 = vsel %vm4257_vm4, %v480_v51, %v484_v35  ;;  %v495_v1 = vsel %vm4257_vm4, %v490_v55, %v494_v40  ;;  %v500_v14 = vshll.u32 %v4275_v54, 16  ;;  %v506_v18 = vshll.u32 %v4279_v59, 16  ;;  %5828 = vst [vmem:[#allocation13_spill] sm:$0xff] %v4316_v37  ;;  %v4324_v43 = vld [vmem:[%s5773_s1 + $0x8] sm:$0x3]  ;;  %s3995_s27 = scalar_lea.vmem %s5660_s12, 4096 }
  0x29   : > { %v321_v2 = vor.u32 %v320_v57, %v316_v56  ;;  %v326_v3 = vrot.slane %v324_v58, 5  ;;  %v4295_v11 = vcombine.low %v485_v60, %v495_v1  ;;  %v312_v12 = vrot.slane %v311_v61, 4  ;;  %v4329_v48 = vld [vmem:[%s4212_s11 + $0x7c] sm:$0xf]  ;;  %v4337_v58 = vld [vmem:[%s4212_s11 + $0x80] sm:$0x1]  ;;  %p3996_p11 = scmp.ne.s32.totalorder %s5660_s12, %s3995_s27  ;;  %p4003_p1 = scmp.lt.s32.totalorder %s4001_s30, %s3995_s27 }
  0x2a   : > { %v499_v20 = vrot.slane %v497_v9, 4  ;;  %v510_v21 = vshrl.u32 %v4279_v59, 16  ;;  %v516_v22 = vshll.u32 %v4287_v0, 16  ;;  %v502_v25 = vrot.slane %v500_v14, 5  ;;  %5830 = vst [vmem:[#allocation15_spill] sm:$0xff] %v4329_v48  ;;  %5831 = vst [vmem:[#allocation16_spill] sm:$0xff] %v4337_v58 }
  0x2b   : > { %5827 = vst [vmem:[#allocation12_spill] sm:$0xff] %v4295_v11  ;;  %v322_v19 = vrot.slane %v321_v2, 4  ;;  %3625 = vmatprep.mubr.msk.bf16.mxu1 %vm712_vm3, %v4295_v11  ;;  %v317_v24 = vsel %vm4257_vm4, %v312_v12, %v316_v56  ;;  %v508_v26 = vrot.slane %v506_v18, 5  ;;  %v329_v28 = vshrl.u32 %v4293_v10, 16  ;;  %v4351_v18 = vld [vmem:[%s4212_s11 + $0x28] sm:$0xf]  ;;  %p3997_p12 = pnand %p3996_p11, %p4183_p5  ;;  %p4004_p2 = por %p4003_p1, %p4002_p0 }
  0x2c   : > { %v512_v33 = vrot.slane %v510_v21, 4  ;;  %v518_v34 = vrot.slane %v516_v22, 5  ;;  %v332_v35 = vshll.u32 %v4293_v10, 16  ;;  %v503_v39 = vor.u32 %v502_v25, %v499_v20 }
  0x2d   : > { %v327_v29 = vsel %vm4257_vm4, %v322_v19, %v326_v3  ;;  %v331_v40 = vrot.slane %v329_v28, 4  ;;  %v338_v41 = vshll.u32 %v4302_v23, 16  ;;  %v342_v46 = vshrl.u32 %v4302_v23, 16  ;;  %v4343_v3 = vld [vmem:[%s4212_s11 + $0x24] sm:$0xf]  ;;  %p3998_p13 = pneg %p3997_p12 }
  0x2e   : > { %v4318_v38 = vcombine.low %v317_v24, %v327_v29  ;;  %v513_v44 = vor.u32 %v512_v33, %v508_v26  ;;  %v334_v45 = vrot.slane %v332_v35, 5  ;;  %v348_v47 = vshll.u32 %v4309_v27, 16  ;;  %v4359_v24 = vld [vmem:[%s5773_s1 + $0x6] sm:$0x3]  ;;  %v4364_v29 = vld [vmem:[%s4212_s11 + $0x2c] sm:$0x1] }
  0x2f   : > { %v504_v49 = vrot.slane %v503_v39, 4  ;;  %v340_v50 = vrot.slane %v338_v41, 5  ;;  %v521_v51 = vshrl.u32 %v4316_v37, 16  ;;  %v524_v52 = vshll.u32 %v4316_v37, 16  ;;  %v4372_v41 = vld [vmem:[%s4212_s11 + $0x84] sm:$0xf]  ;;  %p4005_p3 = pnand %p4004_p2, %p3998_p13 }
  0x30   : > { %5829 = vst [vmem:[#allocation14_spill] sm:$0xff] %v4318_v38  ;;  %3610 = vmatmul.mubr.msk.bf16.vlgmr.msra.gmra.mxu0 %vm712_vm3, %v4318_v38  ;;  %v514_v53 = vrot.slane %v513_v44, 4  ;;  %v335_v55 = vor.u32 %v334_v45, %v331_v40  ;;  %v344_v56 = vrot.slane %v342_v46, 4  ;;  %v350_v57 = vrot.slane %v348_v47, 5  ;;  %v4519_v38 = vld [vmem:[%s4212_s11 + $0xb0] sm:$0x1] }
  0x31   : > { %3676 = vmatpush3.bf16.msra.mxu0 %v4218_v5  ;;  %v509_v60 = vsel %vm4257_vm4, %v504_v49, %v508_v26  ;;  %v523_v61 = vrot.slane %v521_v51, 4  ;;  %v526_v1 = vrot.slane %v524_v52, 5  ;;  %v530_v2 = vshll.u32 %v4329_v48, 16  ;;  %v4379_v49 = vld [vmem:[%s4212_s11 + $0x88] sm:$0xf]  ;;  %5843 = vst [vmem:[#allocation28_spill] sm:$0xff] %v4519_v38 }
  0x32   : > { %3920 = vmatprep.subr.msk.bf16.mxu0 %vm761_vm0, %v4324_v43  ;;  %v519_v5 = vsel %vm4257_vm4, %v514_v53, %v518_v34  ;;  %v336_v9 = vrot.slane %v335_v55, 4  ;;  %v345_v12 = vor.u32 %v344_v56, %v340_v50  ;;  %v534_v14 = vshrl.u32 %v4329_v48, 16  ;;  %v4541_v48 = vld [vmem:[%s4212_s11 + $0x5c] sm:$0x1] }
  0x33   : > { %v4353_v19 = vcombine.low %v509_v60, %v519_v5  ;;  %v527_v20 = vor.u32 %v526_v1, %v523_v61  ;;  %v532_v21 = vrot.slane %v530_v2, 5  ;;  %v540_v22 = vshll.u32 %v4337_v58, 16 }
  0x34   : > { %v341_v25 = vsel %vm4257_vm4, %v336_v9, %v340_v50  ;;  %v346_v26 = vrot.slane %v345_v12, 4  ;;  %v536_v28 = vrot.slane %v534_v14, 4  ;;  %v353_v33 = vshrl.u32 %v4343_v3, 16  ;;  %v4398_v9 = vld [vmem:[%s4212_s11 + $0x30] sm:$0xf] }
  0x35   : > { %5832 = vst [vmem:[#allocation17_spill] sm:$0xff] %v4353_v19  ;;  %3626 = vmatmul.mubr.msk.bf16.vlgmr.msra.gmra.mxu1 %vm712_vm3, %v4353_v19  ;;  %v528_v34 = vrot.slane %v527_v20, 4  ;;  %v542_v35 = vrot.slane %v540_v22, 5  ;;  %v356_v39 = vshll.u32 %v4343_v3, 16  ;;  %v362_v40 = vshll.u32 %v4351_v18, 16 }
  0x36   : > { %3642 = vmatpush3.bf16.msra.mxu1 %v4215_v4  ;;  %v351_v44 = vsel %vm4257_vm4, %v346_v26, %v350_v57  ;;  %v537_v45 = vor.u32 %v536_v28, %v532_v21  ;;  %v355_v46 = vrot.slane %v353_v33, 4  ;;  %v366_v47 = vshrl.u32 %v4351_v18, 16  ;;  %v4389_v57 = vld [vmem:[%s4212_s11 + $0x8c] sm:$0x1]  ;;  %v4403_v22 = vld [vmem:[%s4212_s11 + $0x34] sm:$0xf] }
  0x37   : > { %v4381_v50 = vcombine.low %v341_v25, %v351_v44  ;;  %v533_v51 = vsel %vm4257_vm4, %v528_v34, %v532_v21  ;;  %v358_v52 = vrot.slane %v356_v39, 5  ;;  %v364_v53 = vrot.slane %v362_v40, 5  ;;  %3919 = vmatprep.subr.msk.bf16.mxu1 %vm761_vm0, %v4359_v24 }
  0x38   : > { %v538_v4 = vrot.slane %v537_v45, 4  ;;  %v368_v55 = vrot.slane %v366_v47, 4  ;;  %v372_v56 = vshll.u32 %v4364_v29, 16  ;;  %v545_v60 = vshrl.u32 %v4372_v41, 16 }
  0x39   : > { %5833 = vst [vmem:[#allocation18_spill] sm:$0xff] %v4381_v50  ;;  %3613 = vmatprep.mubr.msk.bf16.mxu0 %vm712_vm3, %v4381_v50  ;;  %v359_v61 = vor.u32 %v358_v52, %v355_v46  ;;  %v548_v1 = vshll.u32 %v4372_v41, 16  ;;  %v554_v2 = vshll.u32 %v4379_v49, 16  ;;  %v558_v5 = vshrl.u32 %v4379_v49, 16  ;;  %v4414_v46 = vld [vmem:[%s4212_s11 + $0x38] sm:$0x1] }
  0x3a   : > { %v543_v12 = vsel %vm4257_vm4, %v538_v4, %v542_v35  ;;  %v369_v14 = vor.u32 %v368_v55, %v364_v53  ;;  %v374_v20 = vrot.slane %v372_v56, 5  ;;  %v547_v21 = vrot.slane %v545_v60, 4  ;;  %v4419_v52 = vld [vmem:[%s4212_s11 + $0x90] sm:$0xf] }
  0x3b   : > { %v4405_v25 = vcombine.low %v533_v51, %v543_v12  ;;  %v360_v26 = vrot.slane %v359_v61, 4  ;;  %v550_v28 = vrot.slane %v548_v1, 5  ;;  %v556_v33 = vrot.slane %v554_v2, 5  ;;  %v4424_v61 = vld [vmem:[%s4212_s11 + $0x94] sm:$0xf] }
  0x3c   : > { %v370_v34 = vrot.slane %v369_v14, 4  ;;  %v560_v39 = vrot.slane %v558_v5, 4  ;;  %v564_v40 = vshll.u32 %v4389_v57, 16  ;;  %v377_v44 = vshrl.u32 %v4398_v9, 16 }
  0x3d   : > { %5834 = vst [vmem:[#allocation19_spill] sm:$0xff] %v4405_v25  ;;  %3629 = vmatprep.mubr.msk.bf16.mxu1 %vm712_vm3, %v4405_v25  ;;  %v365_v35 = vsel %vm4257_vm4, %v360_v26, %v364_v53  ;;  %v551_v45 = vor.u32 %v550_v28, %v547_v21  ;;  %v380_v47 = vshll.u32 %v4398_v9, 16  ;;  %v386_v51 = vshll.u32 %v4403_v22, 16  ;;  %v4470_v25 = vld [vmem:[%s4212_s11 + $0xa0] sm:$0xf] }
  0x3e   : > { %v375_v4 = vsel %vm4257_vm4, %v370_v34, %v374_v20  ;;  %v561_v55 = vor.u32 %v560_v39, %v556_v33  ;;  %v566_v56 = vrot.slane %v564_v40, 5  ;;  %v379_v60 = vrot.slane %v377_v44, 4  ;;  %v4436_v34 = vld [vmem:[%s4212_s11 + $0x98] sm:$0x1]  ;;  %v4441_v44 = vld [vmem:[%s4212_s11 + $0x3c] sm:$0xf] }
  0x3f   : > { %v4426_v53 = vcombine.low %v365_v35, %v375_v4  ;;  %v552_v1 = vrot.slane %v551_v45, 4  ;;  %v382_v2 = vrot.slane %v380_v47, 5  ;;  %v388_v5 = vrot.slane %v386_v51, 5  ;;  %v4446_v4 = vld [vmem:[%s4212_s11 + $0x40] sm:$0xf] }
  0x40   : > { %v562_v12 = vrot.slane %v561_v55, 4  ;;  %v390_v14 = vshrl.u32 %v4403_v22, 16  ;;  %v396_v21 = vshll.u32 %v4414_v46, 16  ;;  %v569_v20 = vshrl.u32 %v4419_v52, 16 }
  0x41   : > { %5835 = vst [vmem:[#allocation20_spill] sm:$0xff] %v4426_v53  ;;  %3614 = vmatmul.mubr.msk.bf16.gmra.mxu0 %vm712_vm3, %v4426_v53  ;;  %v557_v26 = vsel %vm4257_vm4, %v552_v1, %v556_v33  ;;  %v383_v28 = vor.u32 %v382_v2, %v379_v60  ;;  %v572_v39 = vshll.u32 %v4419_v52, 16  ;;  %v578_v40 = vshll.u32 %v4424_v61, 16 }
  0x42   : > { %v567_v35 = vsel %vm4257_vm4, %v562_v12, %v566_v56  ;;  %v392_v45 = vrot.slane %v390_v14, 4  ;;  %v398_v47 = vrot.slane %v396_v21, 5  ;;  %v571_v51 = vrot.slane %v569_v20, 4  ;;  %v4458_v14 = vld [vmem:[%s4212_s11 + $0x44] sm:$0x1] }
  0x43   : > { %v4448_v33 = vcombine.low %v557_v26, %v567_v35  ;;  %v384_v55 = vrot.slane %v383_v28, 4  ;;  %v574_v60 = vrot.slane %v572_v39, 5  ;;  %v580_v1 = vrot.slane %v578_v40, 5  ;;  %v4463_v26 = vld [vmem:[%s4212_s11 + $0x9c] sm:$0xf] }
  0x44   : > { %v393_v2 = vor.u32 %v392_v45, %v388_v5  ;;  %v582_v36 = vshrl.u32 %v4424_v61, 16  ;;  %v588_v63 = vshll.u32 %v4436_v34, 16  ;;  %v401_v15 = vshrl.u32 %v4441_v44, 16 }
  0x45   : > { %5836 = vst [vmem:[#allocation21_spill] sm:$0xff] %v4448_v33  ;;  %3630 = vmatmul.mubr.msk.bf16.gmra.mxu1 %vm712_vm3, %v4448_v33  ;;  %v389_v56 = vsel %vm4257_vm4, %v384_v55, %v388_v5  ;;  %v575_v12 = vor.u32 %v574_v60, %v571_v51  ;;  %v404_v21 = vshll.u32 %v4441_v44, 16  ;;  %v410_v20 = vshll.u32 %v4446_v4, 16 }
  0x46   : > { %v394_v28 = vrot.slane %v393_v2, 4  ;;  %v584_v39 = vrot.slane %v582_v36, 4  ;;  %v590_v40 = vrot.slane %v588_v63, 5  ;;  %v403_v35 = vrot.slane %v401_v15, 4 }
  0x47   : > { %v576_v45 = vrot.slane %v575_v12, 4  ;;  %v406_v62 = vrot.slane %v404_v21, 5  ;;  %v412_v33 = vrot.slane %v410_v20, 5  ;;  %v414_v5 = vshrl.u32 %v4446_v4, 16  ;;  %v4478_v21 = vld [vmem:[%s4212_s11 + $0xa4] sm:$0x1] }
  0x48   : > { %v399_v51 = vsel %vm4257_vm4, %v394_v28, %v398_v47  ;;  %v585_v55 = vor.u32 %v584_v39, %v580_v1  ;;  %v420_v60 = vshll.u32 %v4458_v14, 16  ;;  %v593_v2 = vshrl.u32 %v4463_v26, 16  ;;  %5838 = vst [vmem:[#allocation23_spill] sm:$0xff] %v4478_v21  ;;  %v4481_v20 = vld [vmem:[%s4212_s11 + $0x48] sm:$0xf] }
  0x49   : > { %v4473_v36 = vcombine.low %v389_v56, %v399_v51  ;;  %v581_v15 = vsel %vm4257_vm4, %v576_v45, %v580_v1  ;;  %v407_v63 = vor.u32 %v406_v62, %v403_v35  ;;  %v416_v12 = vrot.slane %v414_v5, 4 }
  0x4a   : > { %v586_v47 = vrot.slane %v585_v55, 4  ;;  %v422_v28 = vrot.slane %v420_v60, 5  ;;  %v595_v39 = vrot.slane %v593_v2, 4  ;;  %v596_v19 = vshll.u32 %v4463_v26, 16  ;;  %v4492_v55 = vld [vmem:[%s4212_s11 + $0x4c] sm:$0xf] }
  0x4b   : > { %5837 = vst [vmem:[#allocation22_spill] sm:$0xff] %v4473_v36  ;;  %3617 = vmatprep.mubr.msk.bf16.mxu0 %vm712_vm3, %v4473_v36  ;;  %v408_v56 = vrot.slane %v407_v63, 4  ;;  %v417_v51 = vor.u32 %v416_v12, %v412_v33  ;;  %v602_v1 = vshll.u32 %v4470_v25, 16  ;;  %v606_v62 = vshrl.u32 %v4470_v25, 16  ;;  %v4500_v36 = vld [vmem:[%s4212_s11 + $0x50] sm:$0x1] }
  0x4c   : > { %v591_v35 = vsel %vm4257_vm4, %v586_v47, %v590_v40  ;;  %v598_v45 = vrot.slane %v596_v19, 5  ;;  %v612_v5 = vshll.u32 %v4478_v21, 16  ;;  %v425_v60 = vshrl.u32 %v4481_v20, 16  ;;  %v4503_v47 = vld [vmem:[%s4212_s11 + $0xa8] sm:$0xf] }
  0x4d   : > { %v4495_v2 = vcombine.low %v581_v15, %v591_v35  ;;  %v413_v63 = vsel %vm4257_vm4, %v408_v56, %v412_v33  ;;  %v418_v12 = vrot.slane %v417_v51, 4  ;;  %v604_v11 = vrot.slane %v602_v1, 5  ;;  %5840 = vst [vmem:[#allocation25_spill] sm:$0xff] %v4503_v47 }
  0x4e   : > { %v599_v53 = vor.u32 %v598_v45, %v595_v39  ;;  %v608_v50 = vrot.slane %v606_v62, 4  ;;  %v614_v40 = vrot.slane %v612_v5, 5  ;;  %v427_v19 = vrot.slane %v425_v60, 4  ;;  %v4516_v45 = vld [vmem:[%s4212_s11 + $0xac] sm:$0xf] }
  0x4f   : > { %5839 = vst [vmem:[#allocation24_spill] sm:$0xff] %v4495_v2  ;;  %3633 = vmatprep.mubr.msk.bf16.mxu1 %vm712_vm3, %v4495_v2  ;;  %v423_v15 = vsel %vm4257_vm4, %v418_v12, %v422_v28  ;;  %v428_v33 = vshll.u32 %v4481_v20, 16  ;;  %v434_v56 = vshll.u32 %v4492_v55, 16  ;;  %v438_v51 = vshrl.u32 %v4492_v55, 16  ;;  %5842 = vst [vmem:[#allocation27_spill] sm:$0xff] %v4516_v45 }
  0x50   : > { %v4512_v1 = vcombine.low %v413_v63, %v423_v15  ;;  %v600_v39 = vrot.slane %v599_v53, 4  ;;  %v609_v62 = vor.u32 %v608_v50, %v604_v11  ;;  %v444_v35 = vshll.u32 %v4500_v36, 16 }
  0x51   : > { %v430_v5 = vrot.slane %v428_v33, 5  ;;  %v436_v60 = vrot.slane %v434_v56, 5  ;;  %v440_v2 = vrot.slane %v438_v51, 4  ;;  %v617_v28 = vshrl.u32 %v4503_v47, 16  ;;  %v4529_v51 = vld [vmem:[%s4212_s11 + $0x54] sm:$0xf] }
  0x52   : > { %5841 = vst [vmem:[#allocation26_spill] sm:$0xff] %v4512_v1  ;;  %3618 = vmatmul.mubr.msk.bf16.gmra.mxu0 %vm712_vm3, %v4512_v1  ;;  %v605_v53 = vsel %vm4257_vm4, %v600_v39, %v604_v11  ;;  %v610_v50 = vrot.slane %v609_v62, 4  ;;  %v446_v63 = vrot.slane %v444_v35, 5  ;;  %v620_v12 = vshll.u32 %v4503_v47, 16  ;;  %v4536_v62 = vld [vmem:[%s4212_s11 + $0x58] sm:$0xf] }
  0x53   : > { %v431_v15 = vor.u32 %v430_v5, %v427_v19  ;;  %v441_v58 = vor.u32 %v440_v2, %v436_v60  ;;  %v619_v33 = vrot.slane %v617_v28, 4  ;;  %v626_v56 = vshll.u32 %v4516_v45, 16 }
  0x54   : > { %v615_v1 = vsel %vm4257_vm4, %v610_v50, %v614_v40  ;;  %v622_v37 = vrot.slane %v620_v12, 5  ;;  %v630_v11 = vshrl.u32 %v4516_v45, 16  ;;  %v636_v39 = vshll.u32 %v4519_v38, 16 }
  0x55   : > { %v4538_v2 = vcombine.low %v605_v53, %v615_v1  ;;  %v432_v19 = vrot.slane %v431_v15, 4  ;;  %v442_v35 = vrot.slane %v441_v58, 4  ;;  %v628_v5 = vrot.slane %v626_v56, 5 }
  0x56   : > { %v623_v28 = vor.u32 %v622_v37, %v619_v33  ;;  %v632_v0 = vrot.slane %v630_v11, 4  ;;  %v638_v54 = vrot.slane %v636_v39, 5  ;;  %v449_v40 = vshrl.u32 %v4529_v51, 16  ;;  %v4553_v37 = vld [vmem:[%s4212_s11 + $0xb4] sm:$0xf] }
  0x57   : > { %5844 = vst [vmem:[#allocation29_spill] sm:$0xff] %v4538_v2  ;;  %3634 = vmatmul.mubr.msk.bf16.gmra.mxu1 %vm712_vm3, %v4538_v2  ;;  %v437_v50 = vsel %vm4257_vm4, %v432_v19, %v436_v60  ;;  %v447_v1 = vsel %vm4257_vm4, %v442_v35, %v446_v63  ;;  %v452_v58 = vshll.u32 %v4529_v51, 16  ;;  %v458_v53 = vshll.u32 %v4536_v62, 16  ;;  %5845 = vst [vmem:[#allocation30_spill] sm:$0xff] %v4553_v37  ;;  %v4558_v11 = vld [vmem:[%s4212_s11 + $0xb8] sm:$0xf] }
  0x58   : > { %v4555_v12 = vcombine.low %v437_v50, %v447_v1  ;;  %v624_v15 = vrot.slane %v623_v28, 4  ;;  %v633_v33 = vor.u32 %v632_v0, %v628_v5  ;;  %v451_v56 = vrot.slane %v449_v40, 4 }
  0x59   : > { %v454_v39 = vrot.slane %v452_v58, 5  ;;  %v460_v2 = vrot.slane %v458_v53, 5  ;;  %v462_v60 = vshrl.u32 %v4536_v62, 16  ;;  %v468_v63 = vshll.u32 %v4541_v48, 16  ;;  %v4569_v58 = vld [vmem:[%s4212_s11 + $0xbc] sm:$0x1] }
  0x5a   : > { %5846 = vst [vmem:[#allocation31_spill] sm:$0xff] %v4555_v12  ;;  %3621 = vmatprep.mubr.msk.bf16.mxu0 %vm712_vm3, %v4555_v12  ;;  %v629_v19 = vsel %vm4257_vm4, %v624_v15, %v628_v5  ;;  %v634_v35 = vrot.slane %v633_v33, 4  ;;  %v641_v28 = vshrl.u32 %v4553_v37, 16  ;;  %v644_v0 = vshll.u32 %v4553_v37, 16 }
  0x5b   : > { %v455_v40 = vor.u32 %v454_v39, %v451_v56  ;;  %v464_v50 = vrot.slane %v462_v60, 4  ;;  %v470_v1 = vrot.slane %v468_v63, 5  ;;  %v650_v53 = vshll.u32 %v4558_v11, 16 }
  0x5c   : > { %v639_v38 = vsel %vm4257_vm4, %v634_v35, %v638_v54  ;;  %v643_v47 = vrot.slane %v641_v28, 4  ;;  %v646_v12 = vrot.slane %v644_v0, 5  ;;  %v654_v45 = vshrl.u32 %v4558_v11, 16 }
  0x5d   : > { %v4575_v5 = vcombine.low %v629_v19, %v639_v38  ;;  %v456_v15 = vrot.slane %v455_v40, 4  ;;  %v465_v33 = vor.u32 %v464_v50, %v460_v2  ;;  %v652_v21 = vrot.slane %v650_v53, 5 }
  0x5e   : > { %v647_v37 = vor.u32 %v646_v12, %v643_v47  ;;  %v656_v56 = vrot.slane %v654_v45, 4  ;;  %v660_v39 = vshll.u32 %v4569_v58, 16  ;;  %v3294_v54 = vrot.slane %v4221_v6, 9 }
  0x5f   : > { %3637 = vmatprep.mubr.msk.bf16.mxu1 %vm712_vm3, %v4575_v5  ;;  %v461_v38 = vsel %vm4257_vm4, %v456_v15, %v460_v2  ;;  %v466_v63 = vrot.slane %v465_v33, 4  ;;  %v1239_v47 = vrot.slane %v4224_v7, 5  ;;  %v4592_v45 = vcombine.low %v4250_v30, %v4253_v31 }
  0x60   : > { %v648_v12 = vrot.slane %v647_v37, 4  ;;  %v657_v19 = vor.u32 %v656_v56, %v652_v21  ;;  %v662_v35 = vrot.slane %v660_v39, 5  ;;  %v3295_v28 = vrot.slane %v4250_v30, 9 }
  0x61   : > { %v471_v0 = vsel %vm4257_vm4, %v466_v63, %v470_v1  ;;  %v1240_v40 = vsel %vm4580_vm7, %v3294_v54, %v1239_v47  ;;  %v1241_v50 = vrot.slane %v1239_v47, 4  ;;  %v5849_v2 = vrot.slane %v4253_v31, 5 }
  0x62   : > { %v4601_v15 = vcombine.low %v461_v38, %v471_v0  ;;  %v653_v33 = vsel %vm4257_vm4, %v648_v12, %v652_v21  ;;  %v658_v37 = vrot.slane %v657_v19, 4  ;;  %v5851_v1 = vrot.slane %v4227_v8, 5 }
  0x63   : > { %v1248_v53 = vrot.slane %v5849_v2, 4  ;;  %v5850_v56 = vmov %v5849_v2  ;;  %v5852_v54 = vrot.slane %v4264_v42, 5  ;;  %v4619_v63 = vcombine.low %v4293_v10, %v4302_v23 }
  0x64   : > { %v1247_v30 = vsel %vm4580_vm7, %v3295_v28, %v5850_v56  ;;  %v1243_v39 = vsel %vm4580_vm7, %v1241_v50, %v5851_v1  ;;  %v3296_v21 = vrot.slane %v4293_v10, 9  ;;  %3622 = vmatmul.mubr.msk.bf16.gmra.mxu0 %vm712_vm3, %v4601_v15  ;;  %v663_v8 = vsel %vm4257_vm4, %v658_v37, %v662_v35 }
  0x65   : > { %v1250_v38 = vsel %vm4580_vm7, %v1248_v53, %v5852_v54  ;;  %v3310_v31 = vcombine.low %v1240_v40, %v1243_v39  ;;  %v1253_v42 = vrot.slane %v4302_v23, 5  ;;  %v4629_v12 = vcombine.low %v653_v33, %v663_v8 }
  0x66   : > { %v4626_v47 = vcombine.low %v1247_v30, %v1250_v38  ;;  %v1256_v19 = vrot.slane %v4309_v27, 5  ;;  %v1260_v0 = vrot.slane %v4351_v18, 5  ;;  %v3297_v35 = vrot.slane %v4343_v3, 9 }
  0x67   : > { %5853 = vst [vmem:[#allocation32_spill] sm:$0xff] %v4629_v12  ;;  %3677 = vmatprep.mubr.msk.bf16.mxu0 %vm712_vm3, %v3310_v31  ;;  %v1254_v10 = vsel %vm4580_vm7, %v3296_v21, %v1253_v42  ;;  %v1255_v28 = vrot.slane %v1253_v42, 4  ;;  %3638 = vmatmul.mubr.msk.bf16.gmra.mxu1 %vm712_vm3, %v4629_v12  ;;  %v3298_v40 = vrot.slane %v4398_v9, 9  ;;  %v1267_v23 = vrot.slane %v4403_v22, 5 }
  0x68   : > { %v5854_v27 = vcombine.low %v4221_v6, %v4224_v7  ;;  %v1262_v2 = vrot.slane %v1260_v0, 4  ;;  %v1263_v53 = vrot.slane %v4364_v29, 5  ;;  %v1270_v33 = vrot.slane %v4414_v46, 5  ;;  %v4664_v46 = vld [vmem:[%s5773_s1 + $0xc] sm:$0x3] }
  0x69   : > { %v1257_v50 = vsel %vm4580_vm7, %v1255_v28, %v1256_v19  ;;  %v1269_v56 = vrot.slane %v1267_v23, 4  ;;  %v1876_v30 = vsel %vm761_vm0, %v4324_v43, 0  ;;  %v1274_v1 = vrot.slane %v4446_v4, 5  ;;  %v4681_v19 = vld [vmem:[%s5773_s1 + $0xa] sm:$0x3] }
  0x6a   : > { %3643 = vmatprep.mubr.msk.bf16.mxu1 %vm712_vm3, %v5854_v27  ;;  %v4649_v37 = vcombine.low %v1254_v10, %v1257_v50  ;;  %v1650_v6 = vsel %vm761_vm0, %v4359_v24, 0  ;;  %v1261_v7 = vsel %vm4580_vm7, %v3297_v35, %v1260_v0  ;;  %v1268_v39 = vsel %vm4580_vm7, %v3298_v40, %v1267_v23 }
  0x6b   : > { %v1281_v29 = vrot.slane %v4492_v55, 5  ;;  %v1264_v43 = vsel %vm4580_vm7, %v1262_v2, %v1263_v53  ;;  %v1271_v24 = vsel %vm4580_vm7, %v1269_v56, %v1270_v33  ;;  %v3299_v54 = vrot.slane %v4441_v44, 9 }
  0x6c   : > { %3678 = vmatmul.mubr.msk.bf16.vlgmr.msra.gmra.mxu0 %vm712_vm3, %v4626_v47  ;;  %v1277_v38 = vrot.slane %v4458_v14, 5  ;;  %v1276_v21 = vrot.slane %v1274_v1, 4  ;;  %v3300_v8 = vrot.slane %v4481_v20, 9  ;;  %v1284_v42 = vrot.slane %v4500_v36, 5 }
  0x6d   : > { %3744 = vmatpush3.bf16.msra.mxu0 %v1876_v30  ;;  %3681 = vmatprep.mubr.msk.bf16.mxu0 %vm712_vm3, %v4649_v37  ;;  %v1283_v31 = vrot.slane %v1281_v29, 4  ;;  %v4689_v14 = vcombine.low %v1261_v7, %v1264_v43  ;;  %v4691_v10 = vcombine.low %v1268_v39, %v1271_v24  ;;  %v1275_v36 = vsel %vm4580_vm7, %v3299_v54, %v1274_v1 }
  0x6e   : > { %3922 = vmatprep.subr.msk.bf16.mxu0 %vm761_vm0, %v4664_v46  ;;  %v1278_v28 = vsel %vm4580_vm7, %v1276_v21, %v1277_v38  ;;  %v1282_v0 = vsel %vm4580_vm7, %v3300_v8, %v1281_v29  ;;  %v1288_v40 = vrot.slane %v4536_v62, 5  ;;  %v1298_v23 = vrot.slane %v4242_v17, 5  ;;  %v5855_v8 = vld [vmem:[#allocation23_spill] sm:$0xff] }
  0x6f   : > { %3644 = vmatmul.mubr.msk.bf16.vlgmr.msra.gmra.mxu1 %vm712_vm3, %v4592_v45  ;;  %v1285_v35 = vsel %vm4580_vm7, %v1283_v31, %v1284_v42  ;;  %v3301_v27 = vrot.slane %v4529_v51, 9  ;;  %v3302_v50 = vrot.slane %v4234_v13, 9  ;;  %v1295_v2 = vrot.slane %v4239_v16, 5  ;;  %v5856_v42 = vld [vmem:[#allocation27_spill] sm:$0xff] }
  0x70   : > { %3710 = vmatpush3.bf16.msra.mxu1 %v1650_v6  ;;  %3647 = vmatprep.mubr.msk.bf16.mxu1 %vm712_vm3, %v4619_v63  ;;  %v4710_v53 = vcombine.low %v4343_v3, %v4351_v18  ;;  %v4714_v33 = vcombine.low %v4398_v9, %v4403_v22  ;;  %v4718_v56 = vcombine.low %v4441_v44, %v4446_v4  ;;  %v1291_v3 = vrot.slane %v4541_v48, 5 }
  0x71   : > { %3921 = vmatprep.subr.msk.bf16.mxu1 %vm761_vm0, %v4681_v19  ;;  %v4722_v17 = vcombine.low %v4481_v20, %v4492_v55  ;;  %v4726_v30 = vcombine.low %v1275_v36, %v1278_v28  ;;  %v4728_v1 = vcombine.low %v1282_v0, %v1285_v35  ;;  %v4733_v18 = vcombine.low %v4372_v41, %v4379_v49  ;;  %v5857_v36 = vld [vmem:[#allocation25_spill] sm:$0xff] }
  0x72   : > { %v1290_v9 = vrot.slane %v1288_v40, 4  ;;  %v3305_v22 = vrot.slane %v4372_v41, 9  ;;  %v1316_v44 = vrot.slane %v4379_v49, 5  ;;  %v1319_v4 = vrot.slane %v4389_v57, 5 }
  0x73   : > { %v1289_v20 = vsel %vm4580_vm7, %v3301_v27, %v1288_v40  ;;  %v1296_v48 = vsel %vm4580_vm7, %v3302_v50, %v1295_v2  ;;  %v1297_v55 = vrot.slane %v1295_v2, 4  ;;  %v4746_v6 = vcombine.low %v4419_v52, %v4424_v61  ;;  %v5858_v40 = vld [vmem:[#allocation28_spill] sm:$0xff] }
  0x74   : > { %3682 = vmatmul.mubr.msk.bf16.gmra.mxu0 %vm712_vm3, %v4689_v14  ;;  %v1317_v41 = vsel %vm4580_vm7, %v3305_v22, %v1316_v44  ;;  %v1318_v49 = vrot.slane %v1316_v44, 4  ;;  %v3306_v57 = vrot.slane %v4419_v52, 9  ;;  %v1323_v7 = vrot.slane %v4424_v61, 5 }
  0x75   : > { %3685 = vmatprep.mubr.msk.bf16.mxu0 %vm712_vm3, %v4691_v10  ;;  %v1302_v39 = vrot.slane %v4279_v59, 5  ;;  %v1326_v29 = vrot.slane %v4436_v34, 5  ;;  %v4760_v43 = vcombine.low %v4463_v26, %v4470_v25  ;;  %v3307_v24 = vrot.slane %v4463_v26, 9 }
  0x76   : > { %v1292_v54 = vsel %vm4580_vm7, %v1290_v9, %v1291_v3  ;;  %v1320_v52 = vsel %vm4580_vm7, %v1318_v49, %v1319_v4  ;;  %v1324_v61 = vsel %vm4580_vm7, %v3306_v57, %v1323_v7  ;;  %v1325_v38 = vrot.slane %v1323_v7, 4  ;;  %v5859_v3 = vld [vmem:[#allocation30_spill] sm:$0xff]  ;;  %v5860_v57 = vld [vmem:[#allocation15_spill] sm:$0xff] }
  0x77   : > { %3648 = vmatmul.mubr.msk.bf16.gmra.mxu1 %vm712_vm3, %v4710_v53  ;;  %v4769_v21 = vcombine.low %v1317_v41, %v1320_v52  ;;  %v1330_v34 = vrot.slane %v4470_v25, 5  ;;  %v1333_v31 = vrot.slane %v5855_v8, 5  ;;  %v4775_v28 = vcombine.low %v5857_v36, %v5856_v42 }
  0x78   : > { %3651 = vmatprep.mubr.msk.bf16.mxu1 %vm712_vm3, %v4714_v33  ;;  %v1327_v26 = vsel %vm4580_vm7, %v1325_v38, %v1326_v29  ;;  %v3308_v0 = vrot.slane %v5857_v36, 9  ;;  %v1337_v35 = vrot.slane %v5856_v42, 5  ;;  %v1340_v27 = vrot.slane %v5858_v40, 5  ;;  %v5862_v42 = vld [vmem:[#allocation11_spill] sm:$0xff] }
  0x79   : > { %v4784_v50 = vcombine.low %v1324_v61, %v1327_v26  ;;  %v1331_v25 = vsel %vm4580_vm7, %v3307_v24, %v1330_v34  ;;  %v1332_v2 = vrot.slane %v1330_v34, 4  ;;  %v4790_v9 = vcombine.low %v5859_v3, %v4558_v11 }
  0x7a   : > { %v1338_v22 = vsel %vm4580_vm7, %v3308_v0, %v1337_v35  ;;  %v1339_v44 = vrot.slane %v1337_v35, 4  ;;  %v3309_v4 = vrot.slane %v5859_v3, 9  ;;  %v1344_v41 = vrot.slane %v4558_v11, 5  ;;  %v5863_v0 = vld [vmem:[#allocation13_spill] sm:$0xff] }
  0x7b   : > { %v1299_v49 = vsel %vm4580_vm7, %v1297_v55, %v1298_v23  ;;  %v1309_v7 = vrot.slane %v5860_v57, 5  ;;  %v1334_v29 = vsel %vm4580_vm7, %v1332_v2, %v1333_v31  ;;  %v1347_v24 = vrot.slane %v4569_v58, 5  ;;  %v5861_v55 = vld [vmem:[#allocation10_spill] sm:$0xff] }
  0x7c   : > { %3686 = vmatmul.mubr.msk.bf16.gmra.mxu0 %vm712_vm3, %v4726_v30  ;;  %v4806_v52 = vcombine.low %v1331_v25, %v1334_v29  ;;  %v1341_v61 = vsel %vm4580_vm7, %v1339_v44, %v1340_v27  ;;  %v1345_v11 = vsel %vm4580_vm7, %v3309_v4, %v1344_v41  ;;  %v1346_v38 = vrot.slane %v1344_v41, 4  ;;  %v5864_v27 = vld [vmem:[#allocation16_spill] sm:$0xff]  ;;  %v264_v41 = vld [vmem:[%s4212_s11 + $0xc8] sm:$0x1] }
  0x7d   : > { %3689 = vmatprep.mubr.msk.bf16.mxu0 %vm712_vm3, %v4728_v1  ;;  %v4814_v23 = vcombine.low %v1289_v20, %v1292_v54  ;;  %v3303_v34 = vrot.slane %v5861_v55, 9  ;;  %v4817_v58 = vcombine.low %v1338_v22, %v1341_v61  ;;  %v4819_v8 = vcombine.low %v1296_v48, %v1299_v49  ;;  %v4893_v4 = vld [vmem:[%s4212_s11 + $0xc0] sm:$0xf]  ;;  %v5865_v61 = vld [vmem:[#allocation14_spill] sm:$0xff] }
  0x7e   : > { %v1304_v31 = vrot.slane %v1302_v39, 4  ;;  %v1305_v36 = vrot.slane %v5862_v42, 5  ;;  %v1348_v26 = vsel %vm4580_vm7, %v1346_v38, %v1347_v24  ;;  %v3304_v35 = vrot.slane %v5863_v0, 9  ;;  %v5867_v42 = vld [vmem:[#allocation20_spill] sm:$0xff] }
  0x7f   : > { %3652 = vmatmul.mubr.msk.bf16.gmra.mxu1 %vm712_vm3, %v4718_v56  ;;  %v1311_v40 = vrot.slane %v1309_v7, 4  ;;  %v1312_v25 = vrot.slane %v5864_v27, 5  ;;  %v4826_v2 = vcombine.low %v1345_v11, %v1348_v26  ;;  %v4830_v20 = vcombine.low %v4529_v51, %v4536_v62  ;;  %v5871_v26 = vld [vmem:[#allocation12_spill] sm:$0xff] }
  0x80   : > { %3655 = vmatprep.mubr.msk.bf16.mxu1 %vm712_vm3, %v4722_v17  ;;  %v4836_v48 = vcombine.low %v4234_v13, %v4239_v16  ;;  %v1303_v54 = vsel %vm4580_vm7, %v3303_v34, %v1302_v39  ;;  %v1306_v3 = vsel %vm4580_vm7, %v1304_v31, %v1305_v36  ;;  %v1310_v51 = vsel %vm4580_vm7, %v3304_v35, %v1309_v7  ;;  %v5866_v34 = vld [vmem:[#allocation18_spill] sm:$0xff]  ;;  %v5870_v36 = vld [vmem:[#allocation31_spill] sm:$0xff] }
  0x81   : > { %v1313_v62 = vsel %vm4580_vm7, %v1311_v40, %v1312_v25  ;;  %v4852_v13 = vcombine.low %v1303_v54, %v1306_v3  ;;  %v4858_v39 = vcombine.low %v5861_v55, %v4279_v59  ;;  %v4864_v22 = vcombine.low %v5863_v0, %v5860_v57  ;;  %v4887_v59 = vld [vmem:[%s4212_s11 + $0xc4] sm:$0xf]  ;;  %v276_v55 = vld [vmem:[%s5773_s1 + $0x10] sm:$0x3]  ;;  %v5873_v35 = vld [vmem:[#allocation19_spill] sm:$0xff] }
  0x82   : > { %v4854_v16 = vcombine.low %v1310_v51, %v1313_v62  ;;  %v2074_v44 = vrot.slane %v4887_v59, 5  ;;  %v3376_v49 = vrot.slane %v4893_v4, 9  ;;  %v2077_v7 = vrot.slane %v264_v41, 5  ;;  %v5872_v0 = vld [vmem:[#allocation17_spill] sm:$0xff] }
  0x83   : > { %v2290_v38 = vsel %vm761_vm0, %v4664_v46, 0  ;;  %v2086_v31 = vsel %vm761_vm0, %v4681_v19, 0  ;;  %v5868_v46 = vld [vmem:[#allocation22_spill] sm:$0xff]  ;;  %v5874_v40 = vld [vmem:[#allocation21_spill] sm:$0xff]  ;;  %v1846_v27 = vshrl.u32 %v4893_v4, 16  ;;  %v1849_v25 = vshll.u32 %v4893_v4, 16 }
  0x84   : > { %3690 = vmatmul.mubr.msk.bf16.gmra.mxu0 %vm712_vm3, %v4814_v23  ;;  %v2076_v57 = vrot.slane %v2074_v44, 4  ;;  %v2075_v29 = vsel %vm4580_vm7, %v3376_v49, %v2074_v44  ;;  %v5869_v19 = vld [vmem:[#allocation26_spill] sm:$0xff]  ;;  %v1859_v54 = vshrl.u32 %v4887_v59, 16  ;;  %v1855_v3 = vshll.u32 %v4887_v59, 16 }
  0x85   : > { %3693 = vmatprep.mubr.msk.bf16.mxu0 %vm712_vm3, %v4819_v8  ;;  %v1848_v51 = vrot.slane %v1846_v27, 4  ;;  %v1851_v62 = vrot.slane %v1849_v25, 5 }
  0x86   : > { %v2078_v24 = vsel %vm4580_vm7, %v2076_v57, %v2077_v7  ;;  %v1857_v44 = vrot.slane %v1855_v3, 5  ;;  %v1861_v49 = vrot.slane %v1859_v54, 4  ;;  %v5875_v57 = vld [vmem:[#allocation24_spill] sm:$0xff]  ;;  %v5876_v7 = vld [vmem:[#allocation29_spill] sm:$0xff]  ;;  %v3342_v3 = vcombine.low %v4893_v4, %v4887_v59 }
  0x87   : > { %3656 = vmatmul.mubr.msk.bf16.gmra.mxu1 %vm712_vm3, %v4830_v20  ;;  %v4905_v11 = vcombine.low %v2075_v29, %v2078_v24  ;;  %v1852_v29 = vor.u32 %v1851_v62, %v1848_v51  ;;  %v2726_v51 = vsel %vm761_vm0, %v276_v55, 0 }
  0x88   : > { %3659 = vmatprep.mubr.msk.bf16.mxu1 %vm712_vm3, %v4836_v48  ;;  %v1862_v24 = vor.u32 %v1861_v49, %v1857_v44 }
  0x8c   : > { %3694 = vmatmul.mubr.msk.bf16.gmra.mxu0 %vm712_vm3, %v4852_v13 }
  0x8d   : > { %3697 = vmatprep.mubr.msk.bf16.mxu0 %vm712_vm3, %v4854_v16 }
  0x8f   : > { %3660 = vmatmul.mubr.msk.bf16.gmra.mxu1 %vm712_vm3, %v4858_v39 }
  0x90   : > { %3663 = vmatprep.mubr.msk.bf16.mxu1 %vm712_vm3, %v4864_v22 }
  0x94   : > { %3698 = vmatmul.mubr.msk.bf16.gmra.mxu0 %vm712_vm3, %v4769_v21 }
  0x95   : > { %3701 = vmatprep.mubr.msk.bf16.mxu0 %vm712_vm3, %v4784_v50 }
  0x97   : > { %3664 = vmatmul.mubr.msk.bf16.gmra.mxu1 %vm712_vm3, %v4733_v18 }
  0x98   : > { %3667 = vmatprep.mubr.msk.bf16.mxu1 %vm712_vm3, %v4746_v6 }
  0x9c   : > { %3702 = vmatmul.mubr.msk.bf16.gmra.mxu0 %vm712_vm3, %v4806_v52 }
  0x9d   : > { %3705 = vmatprep.mubr.msk.bf16.mxu0 %vm712_vm3, %v4817_v58 }
  0x9f   : > { %3668 = vmatmul.mubr.msk.bf16.gmra.mxu1 %vm712_vm3, %v4760_v43 }
  0xa0   : > { %3671 = vmatprep.mubr.msk.bf16.mxu1 %vm712_vm3, %v4775_v28 }
  0xa4   : > { %3706 = vmatmul.mubr.msk.bf16.gmra.mxu0 %vm712_vm3, %v4826_v2 }
  0xa5   : > { %3745 = vmatprep.mubr.msk.bf16.mxu0 %vm712_vm3, %v5865_v61  ;;  %v1865_v61 = vshll.u32 %v264_v41, 16 }
  0xa7   : > { %3672 = vmatmul.mubr.msk.bf16.gmra.mxu1 %vm712_vm3, %v4790_v9  ;;  %v1867_v27 = vrot.slane %v1865_v61, 5  ;;  %v5097_v61 = vld [vmem:[%s4212_s11 + $0xd0] sm:$0xf] }
  0xa8   : > { %3711 = vmatprep.mubr.msk.bf16.mxu1 %vm712_vm3, %v4592_v45  ;;  %v275_v45 = vld [vmem:[%s5773_s1 + $0xe] sm:$0x3] }
  0xa9   : > { %v2516_v62 = vsel %vm761_vm0, %v275_v45, 0 }
  0xac   : > { %3746 = vmatmul.mubr.msk.bf16.vlgmr.msra.gmra.mxu0 %vm712_vm3, %v5866_v34 }
  0xad   : > { %3812 = vmatpush3.bf16.msra.mxu0 %v2290_v38  ;;  %3749 = vmatprep.mubr.msk.bf16.mxu0 %vm712_vm3, %v5867_v42  ;;  %v1853_v38 = vrot.slane %v1852_v29, 4 }
  0xae   : > { %3924 = vmatprep.subr.msk.bf16.mxu0 %vm761_vm0, %v276_v55 }
  0xaf   : > { %3712 = vmatmul.mubr.msk.bf16.vlgmr.msra.gmra.mxu1 %vm712_vm3, %v4619_v63  ;;  %v1858_v25 = vsel %vm4257_vm4, %v1853_v38, %v1857_v44 }
  0xb0   : > { %3778 = vmatpush3.bf16.msra.mxu1 %v2086_v31  ;;  %3715 = vmatprep.mubr.msk.bf16.mxu1 %vm712_vm3, %v4710_v53  ;;  %v1863_v31 = vrot.slane %v1862_v24, 4 }
  0xb1   : > { %3923 = vmatprep.subr.msk.bf16.mxu1 %vm761_vm0, %v275_v45 }
  0xb2   : > { %v1868_v41 = vsel %vm4257_vm4, %v1863_v31, %v1867_v27 }
  0xb3   : > { %v4987_v54 = vcombine.low %v1858_v25, %v1868_v41 }
  0xb4   : > { %3750 = vmatmul.mubr.msk.bf16.gmra.mxu0 %vm712_vm3, %v5868_v46 }
  0xb5   : > { %3753 = vmatprep.mubr.msk.bf16.mxu0 %vm712_vm3, %v5869_v19  ;;  %5877 = vst [vmem:[#allocation23_spill] sm:$0xff] %v4987_v54 }
  0xb7   : > { %3716 = vmatmul.mubr.msk.bf16.gmra.mxu1 %vm712_vm3, %v4714_v33 }
  0xb8   : > { %3719 = vmatprep.mubr.msk.bf16.mxu1 %vm712_vm3, %v4718_v56 }
  0xbc   : > { %3754 = vmatmul.mubr.msk.bf16.gmra.mxu0 %vm712_vm3, %v5870_v36 }
  0xbd   : > { %3757 = vmatprep.mubr.msk.bf16.mxu0 %vm712_vm3, %v4601_v15 }
  0xbf   : > { %3720 = vmatmul.mubr.msk.bf16.gmra.mxu1 %vm712_vm3, %v4722_v17 }
  0xc0   : > { %3723 = vmatprep.mubr.msk.bf16.mxu1 %vm712_vm3, %v4830_v20 }
  0xc4   : > { %3758 = vmatmul.mubr.msk.bf16.gmra.mxu0 %vm712_vm3, %v5871_v26 }
  0xc5   : > { %3761 = vmatprep.mubr.msk.bf16.mxu0 %vm712_vm3, %v5872_v0 }
  0xc7   : > { %3724 = vmatmul.mubr.msk.bf16.gmra.mxu1 %vm712_vm3, %v4836_v48 }
  0xc8   : > { %3727 = vmatprep.mubr.msk.bf16.mxu1 %vm712_vm3, %v4858_v39 }
  0xcc   : > { %3762 = vmatmul.mubr.msk.bf16.gmra.mxu0 %vm712_vm3, %v5873_v35 }
  0xcd   : > { %3765 = vmatprep.mubr.msk.bf16.mxu0 %vm712_vm3, %v5874_v40 }
  0xcf   : > { %3728 = vmatmul.mubr.msk.bf16.gmra.mxu1 %vm712_vm3, %v4864_v22 }
  0xd0   : > { %3731 = vmatprep.mubr.msk.bf16.mxu1 %vm712_vm3, %v4733_v18 }
  0xd4   : > { %3766 = vmatmul.mubr.msk.bf16.gmra.mxu0 %vm712_vm3, %v5875_v57 }
  0xd5   : > { %3769 = vmatprep.mubr.msk.bf16.mxu0 %vm712_vm3, %v5876_v7 }
  0xd7   : > { %3732 = vmatmul.mubr.msk.bf16.gmra.mxu1 %vm712_vm3, %v4746_v6 }
  0xd8   : > { %3735 = vmatprep.mubr.msk.bf16.mxu1 %vm712_vm3, %v4760_v43 }
  0xdc   : > { %3770 = vmatmul.mubr.msk.bf16.gmra.mxu0 %vm712_vm3, %v4575_v5 }
  0xdd   : > { %3773 = vmatprep.mubr.msk.bf16.mxu0 %vm712_vm3, %v4629_v12 }
  0xdf   : > { %3736 = vmatmul.mubr.msk.bf16.gmra.mxu1 %vm712_vm3, %v4775_v28 }
  0xe0   : > { %3739 = vmatprep.mubr.msk.bf16.mxu1 %vm712_vm3, %v4790_v9 }
  0xe4   : > { %3774 = vmatmul.mubr.msk.bf16.gmra.mxu0 %vm712_vm3, %v4987_v54 }
  0xe5   : > { %3813 = vmatprep.mubr.msk.bf16.mxu0 %vm712_vm3, %v4619_v63 }
  0xe7   : > { %3740 = vmatmul.mubr.msk.bf16.gmra.mxu1 %vm712_vm3, %v3342_v3 }
  0xe8   : > { %3779 = vmatprep.mubr.msk.bf16.mxu1 %vm712_vm3, %v4626_v47 }
  0xec   : > { %3814 = vmatmul.mubr.msk.bf16.vlgmr.msra.gmra.mxu0 %vm712_vm3, %v4710_v53 }
  0xed   : > { %3880 = vmatpush3.bf16.msra.mxu0 %v2726_v51  ;;  %3817 = vmatprep.mubr.msk.bf16.mxu0 %vm712_vm3, %v4714_v33 }
  0xef   : > { %3780 = vmatmul.mubr.msk.bf16.vlgmr.msra.gmra.mxu1 %vm712_vm3, %v4649_v37 }
  0xf0   : > { %3846 = vmatpush3.bf16.msra.mxu1 %v2516_v62  ;;  %3783 = vmatprep.mubr.msk.bf16.mxu1 %vm712_vm3, %v4689_v14  ;;  %v5010_v63 = vpop.f32.mrf.mxu0 }
  0xf2   : > { %v5020_v53 = vpop.f32.mrf.mxu0 }
  0xf4   : > { %3818 = vmatmul.mubr.msk.bf16.gmra.mxu0 %vm712_vm3, %v4718_v56  ;;  %v5026_v56 = vpop.f32.mrf.mxu0 }
  0xf5   : > { %3821 = vmatprep.mubr.msk.bf16.mxu0 %vm712_vm3, %v4722_v17  ;;  %v5016_v47 = vpop.f32.mrf.mxu1 }
  0xf6   : > { %v5036_v59 = vpop.f32.mrf.mxu0 }
  0xf7   : > { %3784 = vmatmul.mubr.msk.bf16.gmra.mxu1 %vm712_vm3, %v4691_v10  ;;  %v5022_v33 = vpop.f32.mrf.mxu1 }
  0xf8   : > { %3787 = vmatprep.mubr.msk.bf16.mxu1 %vm712_vm3, %v4726_v30 }
  0xf9   : > { %v5032_v17 = vpop.f32.mrf.mxu1 }
  0xfb   : > { %v5038_v4 = vpop.f32.mrf.mxu1 }
  0xfc   : > { %3822 = vmatmul.mubr.msk.bf16.gmra.mxu0 %vm712_vm3, %v4830_v20 }
  0xfd   : > { %3825 = vmatprep.mubr.msk.bf16.mxu0 %vm712_vm3, %v4836_v48 }
  0xff   : > { %3788 = vmatmul.mubr.msk.bf16.gmra.mxu1 %vm712_vm3, %v4728_v1 }
 0x100   : > { %3791 = vmatprep.mubr.msk.bf16.mxu1 %vm712_vm3, %v4814_v23 }
 0x101   : > { %v5042_v20 = vpop.f32.mrf.mxu0 }
 0x103   : > { %v5052_v55 = vpop.f32.mrf.mxu0 }
 0x104   : > { %3826 = vmatmul.mubr.msk.bf16.gmra.mxu0 %vm712_vm3, %v4858_v39 }
 0x105   : > { %3829 = vmatprep.mubr.msk.bf16.mxu0 %vm712_vm3, %v4864_v22  ;;  %v5048_v48 = vpop.f32.mrf.mxu1  ;;  %v5058_v39 = vpop.f32.mrf.mxu0 }
 0x107   : > { %3792 = vmatmul.mubr.msk.bf16.gmra.mxu1 %vm712_vm3, %v4819_v8  ;;  %v5054_v45 = vpop.f32.mrf.mxu1  ;;  %v5068_v44 = vpop.f32.mrf.mxu0 }
 0x108   : > { %3795 = vmatprep.mubr.msk.bf16.mxu1 %vm712_vm3, %v4852_v13 }
 0x109   : > { %v5064_v22 = vpop.f32.mrf.mxu1 }
 0x10b   : > { %v5070_v49 = vpop.f32.mrf.mxu1 }
 0x10c   : > { %3830 = vmatmul.mubr.msk.bf16.gmra.mxu0 %vm712_vm3, %v4733_v18 }
 0x10d   : > { %3833 = vmatprep.mubr.msk.bf16.mxu0 %vm712_vm3, %v4746_v6 }
 0x10f   : > { %3796 = vmatmul.mubr.msk.bf16.gmra.mxu1 %vm712_vm3, %v4854_v16 }
 0x110   : > { %3799 = vmatprep.mubr.msk.bf16.mxu1 %vm712_vm3, %v4769_v21 }
 0x112   : > { %v5074_v18 = vpop.f32.mrf.mxu0 }
 0x114   : > { %3834 = vmatmul.mubr.msk.bf16.gmra.mxu0 %vm712_vm3, %v4760_v43  ;;  %v5084_v29 = vpop.f32.mrf.mxu0 }
 0x115   : > { %3837 = vmatprep.mubr.msk.bf16.mxu0 %vm712_vm3, %v4775_v28  ;;  %v5094_v28 = vld [vmem:[%s4212_s11 + $0xcc] sm:$0xf] }
 0x116   : > { %v5090_v43 = vpop.f32.mrf.mxu0 }
 0x117   : > { %3800 = vmatmul.mubr.msk.bf16.gmra.mxu1 %vm712_vm3, %v4784_v50  ;;  %v5080_v6 = vpop.f32.mrf.mxu1 }
 0x118   : > { %5878 = vst [vmem:[#allocation27_spill] sm:$0xff] %v5080_v6  ;;  %3803 = vmatprep.mubr.msk.bf16.mxu1 %vm712_vm3, %v4806_v52  ;;  %v5103_v31 = vpop.f32.mrf.mxu0 }
 0x119   : > { %v5086_v24 = vpop.f32.mrf.mxu1 }
 0x11a   : > { %5879 = vst [vmem:[#allocation25_spill] sm:$0xff] %v5086_v24 }
 0x11b   : > { %v5101_v38 = vpop.f32.mrf.mxu1 }
 0x11c   : > { %3838 = vmatmul.mubr.msk.bf16.gmra.mxu0 %vm712_vm3, %v4790_v9  ;;  %5880 = vst [vmem:[#allocation28_spill] sm:$0xff] %v5101_v38  ;;  %v3394_v9 = vcombine.low %v5094_v28, %v5097_v61 }
 0x11d   : > { %3841 = vmatprep.mubr.msk.bf16.mxu0 %vm712_vm3, %v3342_v3  ;;  %v5109_v27 = vpop.f32.mrf.mxu1 }
 0x11e   : > { %5881 = vst [vmem:[#allocation30_spill] sm:$0xff] %v5109_v27 }
 0x11f   : > { %3804 = vmatmul.mubr.msk.bf16.gmra.mxu1 %vm712_vm3, %v4817_v58 }
 0x120   : > { %3807 = vmatprep.mubr.msk.bf16.mxu1 %vm712_vm3, %v4826_v2 }
 0x124   : > { %v5111_v25 = vpop.f32.mrf.mxu0  ;;  %3842 = vmatmul.mubr.msk.bf16.gmra.mxu0 %vm712_vm3, %v3394_v9 }
 0x125   : > { %3881 = vmatprep.mubr.msk.bf16.mxu0 %vm712_vm3, %v4649_v37 }
 0x126   : > { %v5116_v41 = vpop.f32.mrf.mxu0 }
 0x127   : > { %v5118_v3 = vpop.f32.mrf.mxu1  ;;  %3808 = vmatmul.mubr.msk.bf16.gmra.mxu1 %vm712_vm3, %v4905_v11 }
 0x128   : > { %5882 = vst [vmem:[#allocation15_spill] sm:$0xff] %v5118_v3  ;;  %v5122_v51 = vpop.f32.mrf.mxu0  ;;  %3847 = vmatprep.mubr.msk.bf16.mxu1 %vm712_vm3, %v5866_v34 }
 0x129   : > { %v5126_v62 = vpop.f32.mrf.mxu1 }
 0x12a   : > { %5883 = vst [vmem:[#allocation10_spill] sm:$0xff] %v5126_v62  ;;  %v5128_v27 = vpop.f32.mrf.mxu0 }
 0x12b   : > { %v5130_v9 = vpop.f32.mrf.mxu1 }
 0x12c   : > { %5884 = vst [vmem:[#allocation11_spill] sm:$0xff] %v5130_v9  ;;  %v3679_v38 = vpop.f32.mrf.mxu0  ;;  %3882 = vmatmul.mubr.msk.bf16.vlgmr.msra.gmra.mxu0 %vm712_vm3, %v4689_v14 }
 0x12d   : > { %v5134_v37 = vpop.f32.mrf.mxu1  ;;  %3885 = vmatprep.mubr.msk.bf16.mxu0 %vm712_vm3, %v4691_v10 }
 0x12e   : > { %5885 = vst [vmem:[#allocation13_spill] sm:$0xff] %v5134_v37  ;;  %v1482_v3 = vpop.f32.mrf.mxu0 }
 0x12f   : > { %v3645_v24 = vpop.f32.mrf.mxu1  ;;  %3848 = vmatmul.mubr.msk.bf16.vlgmr.msra.gmra.mxu1 %vm712_vm3, %v5867_v42 }
 0x130   : > { %v1100_v34 = vadd.f32 %v3645_v24, %v5010_v63  ;;  %v3680_v62 = vpop.f32.mrf.mxu0  ;;  %3851 = vmatprep.mubr.msk.bf16.mxu1 %vm712_vm3, %v5868_v46 }
 0x131   : > { %v1091_v9 = vpop.f32.mrf.mxu1 }
 0x132   : > { %v5143_v54 = vadd.f32 %v3679_v38, %v1100_v34  ;;  %v1092_v14 = vadd.f32 %v1091_v9, %v5020_v53  ;;  %v1485_v37 = vpop.f32.mrf.mxu0 }
 0x133   : > { %v3646_v6 = vpop.f32.mrf.mxu1 }
 0x134   : > { %v5146_v32 = vadd.f32 %v1482_v3, %v1092_v14  ;;  %v1103_v10 = vadd.f32 %v3646_v6, %v5026_v56  ;;  %v3683_v12 = vpop.f32.mrf.mxu0  ;;  %3886 = vmatmul.mubr.msk.bf16.gmra.mxu0 %vm712_vm3, %v4726_v30 }
 0x135   : > { %v1094_v42 = vpop.f32.mrf.mxu1  ;;  %3889 = vmatprep.mubr.msk.bf16.mxu0 %vm712_vm3, %v4728_v1 }
 0x136   : > { %v5153_v46 = vadd.f32 %v3680_v62, %v1103_v10  ;;  %v1095_v63 = vadd.f32 %v1094_v42, %v5036_v59  ;;  %v1498_v24 = vpop.f32.mrf.mxu0 }
 0x137   : > { %v3649_v53 = vpop.f32.mrf.mxu1  ;;  %3852 = vmatmul.mubr.msk.bf16.gmra.mxu1 %vm712_vm3, %v5869_v19 }
 0x138   : > { %v5158_v38 = vadd.f32 %v1485_v37, %v1095_v63  ;;  %v1116_v56 = vadd.f32 %v3649_v53, %v5042_v20  ;;  %v3684_v6 = vpop.f32.mrf.mxu0  ;;  %3855 = vmatprep.mubr.msk.bf16.mxu1 %vm712_vm3, %v5870_v36 }
 0x139   : > { %v1107_v30 = vpop.f32.mrf.mxu1 }
 0x13a   : > { %v5163_v3 = vadd.f32 %v3683_v12, %v1116_v56  ;;  %v1108_v1 = vadd.f32 %v1107_v30, %v5052_v55  ;;  %v1501_v62 = vpop.f32.mrf.mxu0 }
 0x13b   : > { %v3650_v59 = vpop.f32.mrf.mxu1 }
 0x13c   : > { %v5166_v9 = vadd.f32 %v1498_v24, %v1108_v1  ;;  %v1119_v34 = vadd.f32 %v3650_v59, %v5058_v39  ;;  %v3687_v19 = vpop.f32.mrf.mxu0  ;;  %3890 = vmatmul.mubr.msk.bf16.gmra.mxu0 %vm712_vm3, %v4814_v23 }
 0x13d   : > { %v1110_v20 = vpop.f32.mrf.mxu1  ;;  %3893 = vmatprep.mubr.msk.bf16.mxu0 %vm712_vm3, %v4819_v8 }
 0x13e   : > { %v5173_v36 = vadd.f32 %v3684_v6, %v1119_v34  ;;  %v1111_v12 = vadd.f32 %v1110_v20, %v5068_v44  ;;  %v1514_v37 = vpop.f32.mrf.mxu0 }
 0x13f   : > { %v3653_v55 = vpop.f32.mrf.mxu1  ;;  %3856 = vmatmul.mubr.msk.bf16.gmra.mxu1 %vm712_vm3, %v4601_v15 }
 0x140   : > { %v5178_v14 = vadd.f32 %v1501_v62, %v1111_v12  ;;  %v1132_v39 = vadd.f32 %v3653_v55, %v5074_v18  ;;  %v3688_v10 = vpop.f32.mrf.mxu0  ;;  %3859 = vmatprep.mubr.msk.bf16.mxu1 %vm712_vm3, %v5871_v26 }
 0x141   : > { %v1123_v23 = vpop.f32.mrf.mxu1 }
 0x142   : > { %v5183_v42 = vadd.f32 %v3687_v19, %v1132_v39  ;;  %v1124_v8 = vadd.f32 %v1123_v23, %v5084_v29  ;;  %v1517_v63 = vpop.f32.mrf.mxu0 }
 0x143   : > { %v3654_v44 = vpop.f32.mrf.mxu1 }
 0x144   : > { %v5186_v24 = vadd.f32 %v1514_v37, %v1124_v8  ;;  %v1135_v53 = vadd.f32 %v3654_v44, %v5090_v43  ;;  %v3691_v15 = vpop.f32.mrf.mxu0  ;;  %3894 = vmatmul.mubr.msk.bf16.gmra.mxu0 %vm712_vm3, %v4852_v13  ;;  %v2489_v37 = vshll.u32 %v5094_v28, 16 }
 0x145   : > { %v1126_v18 = vpop.f32.mrf.mxu1  ;;  %3897 = vmatprep.mubr.msk.bf16.mxu0 %vm712_vm3, %v4854_v16 }
 0x146   : > { %v5193_v26 = vadd.f32 %v3688_v10, %v1135_v53  ;;  %v1127_v56 = vadd.f32 %v1126_v18, %v5103_v31  ;;  %v1530_v6 = vpop.f32.mrf.mxu0  ;;  %v2491_v44 = vrot.slane %v2489_v37, 5 }
 0x147   : > { %v3657_v29 = vpop.f32.mrf.mxu1  ;;  %3860 = vmatmul.mubr.msk.bf16.gmra.mxu1 %vm712_vm3, %v5872_v0 }
 0x148   : > { %v5198_v30 = vadd.f32 %v1517_v63, %v1127_v56  ;;  %v1148_v43 = vadd.f32 %v3657_v29, %v5111_v25  ;;  %v3692_v1 = vpop.f32.mrf.mxu0  ;;  %3863 = vmatprep.mubr.msk.bf16.mxu1 %vm712_vm3, %v5873_v35 }
 0x149   : > { %v1139_v13 = vpop.f32.mrf.mxu1 }
 0x14a   : > { %v5203_v62 = vadd.f32 %v3691_v15, %v1148_v43  ;;  %v1140_v16 = vadd.f32 %v1139_v13, %v5116_v41  ;;  %v1533_v59 = vpop.f32.mrf.mxu0  ;;  %v2486_v41 = vshrl.u32 %v5094_v28, 16 }
 0x14b   : > { %v3658_v31 = vpop.f32.mrf.mxu1 }
 0x14c   : > { %v5206_v34 = vadd.f32 %v1530_v6, %v1140_v16  ;;  %v1151_v19 = vadd.f32 %v3658_v31, %v5122_v51  ;;  %v3695_v0 = vpop.f32.mrf.mxu0  ;;  %3898 = vmatmul.mubr.msk.bf16.gmra.mxu0 %vm712_vm3, %v4769_v21  ;;  %v2495_v51 = vshll.u32 %v5097_v61, 16  ;;  %v2499_v21 = vshrl.u32 %v5097_v61, 16 }
 0x14d   : > { %v1142_v25 = vpop.f32.mrf.mxu1  ;;  %3901 = vmatprep.mubr.msk.bf16.mxu0 %vm712_vm3, %v4784_v50 }
 0x14e   : > { %v5213_v35 = vadd.f32 %v3692_v1, %v1151_v19  ;;  %v1143_v20 = vadd.f32 %v1142_v25, %v5128_v27  ;;  %v1546_v12 = vpop.f32.mrf.mxu0  ;;  %v2497_v15 = vrot.slane %v2495_v51, 5  ;;  %v2501_v18 = vrot.slane %v2499_v21, 4 }
 0x14f   : > { %v3661_v55 = vpop.f32.mrf.mxu1  ;;  %3864 = vmatmul.mubr.msk.bf16.gmra.mxu1 %vm712_vm3, %v5874_v40  ;;  %v2488_v40 = vrot.slane %v2486_v41, 4  ;;  %v3428_v19 = vrot.slane %v5094_v28, 9 }
 0x150   : > { %v5222_v39 = vadd.f32 %v1533_v59, %v1143_v20  ;;  %v1164_v50 = vadd.f32 %v3661_v55, %v5016_v47  ;;  %v3696_v10 = vpop.f32.mrf.mxu0  ;;  %3867 = vmatprep.mubr.msk.bf16.mxu1 %vm712_vm3, %v5875_v57  ;;  %v2714_v57 = vrot.slane %v5097_v61, 5 }
 0x151   : > { %v1155_v27 = vpop.f32.mrf.mxu1 }
 0x152   : > { %v5227_v23 = vadd.f32 %v3695_v0, %v1164_v50  ;;  %v1156_v8 = vadd.f32 %v1155_v27, %v5022_v33  ;;  %v1549_v63 = vpop.f32.mrf.mxu0  ;;  %v267_v33 = vld [vmem:[%s4212_s11 + $0xd4] sm:$0x1]  ;;  %s3453_s11 = sshll.u32 %s4164_s19, 12 }
 0x153   : > { %v3662_v53 = vpop.f32.mrf.mxu1  ;;  %v2505_v31 = vshll.u32 %v267_v33, 16  ;;  %v2717_v25 = vrot.slane %v267_v33, 5  ;;  %s5658_s22 = scalar_lea.hbm %s5774_s2, %s3453_s11 }
 0x154   : > { %v5230_v56 = vadd.f32 %v1546_v12, %v1156_v8  ;;  %v1167_v47 = vadd.f32 %v3662_v53, %v5032_v17  ;;  %v3699_v6 = vpop.f32.mrf.mxu0  ;;  %3902 = vmatmul.mubr.msk.bf16.gmra.mxu0 %vm712_vm3, %v4806_v52  ;;  %v2492_v17 = vor.u32 %v2491_v44, %v2488_v40 }
 0x155   : > { %v1158_v29 = vpop.f32.mrf.mxu1  ;;  %3905 = vmatprep.mubr.msk.bf16.mxu0 %vm712_vm3, %v4817_v58  ;;  %v2502_v58 = vor.u32 %v2501_v18, %v2497_v15  ;;  %v2507_v28 = vrot.slane %v2505_v31, 5 }
 0x156   : > { %v5239_v43 = vadd.f32 %v3696_v10, %v1167_v47  ;;  %v1159_v1 = vadd.f32 %v1158_v29, %v5038_v4  ;;  %v1562_v13 = vpop.f32.mrf.mxu0  ;;  %v2716_v4 = vrot.slane %v2714_v57, 4  ;;  %v2493_v37 = vrot.slane %v2492_v17, 4  ;;  %v5889_v47 = vld [vmem:[#allocation23_spill] sm:$0xff]  ;;  %v5890_v29 = vld [vmem:[#allocation25_spill] sm:$0xff]  ;;  %v5891_v17 = vld [vmem:[#allocation28_spill] sm:$0xff] }
 0x157   : > { %v3665_v16 = vpop.f32.mrf.mxu1  ;;  %3868 = vmatmul.mubr.msk.bf16.gmra.mxu1 %vm712_vm3, %v5876_v7 }
 0x158   : > { %v5244_v59 = vadd.f32 %v1549_v63, %v1159_v1  ;;  %v1180_v52 = vadd.f32 %v3665_v16, %v5048_v48  ;;  %v3700_v61 = vpop.f32.mrf.mxu0  ;;  %3871 = vmatprep.mubr.msk.bf16.mxu1 %vm712_vm3, %v4575_v5  ;;  %v2503_v5 = vrot.slane %v2502_v58, 4  ;;  %v2718_v50 = vsel %vm4580_vm7, %v2716_v4, %v2717_v25  ;;  %v5886_v63 = vld [vmem:[#allocation32_spill] sm:$0xff] }
 0x159   : > { %v1171_v0 = vpop.f32.mrf.mxu1  ;;  %v2498_v40 = vsel %vm4257_vm4, %v2493_v37, %v2497_v15 }
 0x15a   : > { %v5250_v20 = vadd.f32 %v3699_v6, %v1180_v52  ;;  %v1172_v7 = vadd.f32 %v1171_v0, %v5054_v45  ;;  %v1565_v12 = vpop.f32.mrf.mxu0  ;;  %v2715_v45 = vsel %vm4580_vm7, %v3428_v19, %v2714_v57  ;;  %v2508_v60 = vsel %vm4257_vm4, %v2503_v5, %v2507_v28  ;;  %v5892_v19 = vld [vmem:[#allocation30_spill] sm:$0xff] }
 0x15b   : > { %v3666_v41 = vpop.f32.mrf.mxu1  ;;  %v3411_v15 = vcombine.low %v2498_v40, %v2508_v60  ;;  %v5894_v5 = vld [vmem:[#allocation10_spill] sm:$0xff]  ;;  %v5896_v40 = vld [vmem:[#allocation13_spill] sm:$0xff] }
 0x15c   : > { %v5253_v55 = vadd.f32 %v1562_v13, %v1172_v7  ;;  %v1183_v48 = vadd.f32 %v3666_v41, %v5064_v22  ;;  %v3703_v51 = vpop.f32.mrf.mxu0  ;;  %3906 = vmatmul.mubr.msk.bf16.gmra.mxu0 %vm712_vm3, %v4826_v2 }
 0x15d   : > { %v1174_v21 = vpop.f32.mrf.mxu1  ;;  %3909 = vmatprep.mubr.msk.bf16.mxu0 %vm712_vm3, %v4905_v11  ;;  %v5888_v11 = vld [vmem:[#allocation27_spill] sm:$0xff] }
 0x15e   : > { %v5264_v10 = vadd.f32 %v3700_v61, %v1183_v48  ;;  %v1175_v22 = vadd.f32 %v1174_v21, %v5070_v49  ;;  %v1578_v27 = vpop.f32.mrf.mxu0  ;;  %v3429_v49 = vcombine.low %v2715_v45, %v2718_v50 }
 0x15f   : > { %v3669_v8 = vpop.f32.mrf.mxu1  ;;  %3872 = vmatmul.mubr.msk.bf16.gmra.mxu1 %vm712_vm3, %v5886_v63 }
 0x160   : > { %v5271_v44 = vadd.f32 %v1565_v12, %v1175_v22  ;;  %v1196_v53 = vadd.f32 %v3669_v8, %v5888_v11  ;;  %v3704_v18 = vpop.f32.mrf.mxu0  ;;  %3875 = vmatprep.mubr.msk.bf16.mxu1 %vm712_vm3, %v5889_v47  ;;  %v5893_v12 = vld [vmem:[#allocation15_spill] sm:$0xff] }
 0x161   : > { %v1187_v6 = vpop.f32.mrf.mxu1  ;;  %v5895_v22 = vld [vmem:[#allocation11_spill] sm:$0xff] }
 0x162   : > { %v5278_v57 = vadd.f32 %v3703_v51, %v1196_v53  ;;  %v1188_v33 = vadd.f32 %v1187_v6, %v5890_v29  ;;  %v1581_v1 = vpop.f32.mrf.mxu0 }
 0x163   : > { %v3670_v13 = vpop.f32.mrf.mxu1 }
 0x164   : > { %v5281_v16 = vadd.f32 %v1578_v27, %v1188_v33  ;;  %v1199_v52 = vadd.f32 %v3670_v13, %v5891_v17  ;;  %v3707_v61 = vpop.f32.mrf.mxu0  ;;  %3910 = vmatmul.mubr.msk.bf16.gmra.mxu0 %vm712_vm3, %v3429_v49 }
 0x165   : > { %v1190_v58 = vpop.f32.mrf.mxu1 }
 0x166   : > { %v5285_v31 = vadd.f32 %v3704_v18, %v1199_v52  ;;  %v1191_v0 = vadd.f32 %v1190_v58, %v5892_v19  ;;  %v1594_v4 = vpop.f32.mrf.mxu0 }
 0x167   : > { %v3673_v25 = vpop.f32.mrf.mxu1  ;;  %3876 = vmatmul.mubr.msk.bf16.gmra.mxu1 %vm712_vm3, %v3411_v15 }
 0x168   : > { %v5289_v7 = vadd.f32 %v1581_v1, %v1191_v0  ;;  %v1212_v41 = vadd.f32 %v3673_v25, %v5893_v12  ;;  %v3708_v37 = vpop.f32.mrf.mxu0 }
 0x169   : > { %v1203_v48 = vpop.f32.mrf.mxu1 }
 0x16a   : > { %v5292_v51 = vadd.f32 %v3707_v61, %v1212_v41  ;;  %v1204_v28 = vadd.f32 %v1203_v48, %v5894_v5  ;;  %v1597_v21 = vpop.f32.mrf.mxu0 }
 0x16b   : > { %v3674_v45 = vpop.f32.mrf.mxu1 }
 0x16c   : > { %v5295_v50 = vadd.f32 %v1594_v4, %v1204_v28  ;;  %v1215_v27 = vadd.f32 %v3674_v45, %v5895_v22  ;;  %v3747_v8 = vpop.f32.mrf.mxu0 }
 0x16d   : > { %v1206_v63 = vpop.f32.mrf.mxu1 }
 0x16e   : > { %v5298_v2 = vadd.f32 %v3708_v37, %v1215_v27  ;;  %v1207_v11 = vadd.f32 %v1206_v63, %v5896_v40  ;;  %v1912_v53 = vpop.f32.mrf.mxu0 }
 0x16f   : > { %v3713_v18 = vpop.f32.mrf.mxu1 }
 0x170   : > { %v5301_v47 = vadd.f32 %v1597_v21, %v1207_v11  ;;  %v1815_v60 = vadd.f32 %v3713_v18, %v5143_v54  ;;  %v3748_v49 = vpop.f32.mrf.mxu0 }
 0x171   : > { %v1686_v6 = vpop.f32.mrf.mxu1 }
 0x172   : > { %v5304_v29 = vadd.f32 %v3747_v8, %v1815_v60  ;;  %v1813_v33 = vadd.f32 %v1686_v6, %v5146_v32  ;;  %v1915_v1 = vpop.f32.mrf.mxu0 }
 0x173   : > { %v3714_v13 = vpop.f32.mrf.mxu1 }
 0x174   : > { %v5307_v15 = vadd.f32 %v1912_v53, %v1813_v33  ;;  %v1816_v17 = vadd.f32 %v3714_v13, %v5153_v46  ;;  %v3751_v52 = vpop.f32.mrf.mxu0 }
 0x175   : > { %v1689_v61 = vpop.f32.mrf.mxu1 }
 0x176   : > { %v5310_v58 = vadd.f32 %v3748_v49, %v1816_v17  ;;  %v1814_v19 = vadd.f32 %v1689_v61, %v5158_v38  ;;  %v1928_v0 = vpop.f32.mrf.mxu0 }
 0x177   : > { %v3717_v54 = vpop.f32.mrf.mxu1 }
 0x178   : > { %v5313_v4 = vadd.f32 %v1915_v1, %v1814_v19  ;;  %v1819_v25 = vadd.f32 %v3717_v54, %v5163_v3  ;;  %v3752_v12 = vpop.f32.mrf.mxu0 }
 0x179   : > { %v1702_v32 = vpop.f32.mrf.mxu1 }
 0x17a   : > { %v5316_v41 = vadd.f32 %v3751_v52, %v1819_v25  ;;  %v1817_v37 = vadd.f32 %v1702_v32, %v5166_v9  ;;  %v1931_v48 = vpop.f32.mrf.mxu0 }
 0x17b   : > { %v3718_v46 = vpop.f32.mrf.mxu1 }
 0x17c   : > { %v5319_v5 = vadd.f32 %v1928_v0, %v1817_v37  ;;  %v1820_v28 = vadd.f32 %v3718_v46, %v5173_v36  ;;  %v3755_v21 = vpop.f32.mrf.mxu0 }
 0x17d   : > { %v1705_v38 = vpop.f32.mrf.mxu1 }
 0x17e   : > { %v5322_v45 = vadd.f32 %v3752_v12, %v1820_v28  ;;  %v1818_v22 = vadd.f32 %v1705_v38, %v5178_v14  ;;  %v1944_v27 = vpop.f32.mrf.mxu0 }
 0x17f   : > { %v3721_v3 = vpop.f32.mrf.mxu1 }
 0x180   : > { %v5325_v8 = vadd.f32 %v1931_v48, %v1818_v22  ;;  %v1823_v63 = vadd.f32 %v3721_v3, %v5183_v42  ;;  %v3756_v40 = vpop.f32.mrf.mxu0 }
 0x181   : > { %v1718_v9 = vpop.f32.mrf.mxu1 }
 0x182   : > { %v5328_v11 = vadd.f32 %v3755_v21, %v1823_v63  ;;  %v1821_v53 = vadd.f32 %v1718_v9, %v5186_v24  ;;  %v1947_v18 = vpop.f32.mrf.mxu0 }
 0x183   : > { %v3722_v36 = vpop.f32.mrf.mxu1 }
 0x184   : > { %v5331_v60 = vadd.f32 %v1944_v27, %v1821_v53  ;;  %v1824_v49 = vadd.f32 %v3722_v36, %v5193_v26  ;;  %v3759_v6 = vpop.f32.mrf.mxu0 }
 0x185   : > { %v1721_v14 = vpop.f32.mrf.mxu1 }
 0x186   : > { %v5334_v33 = vadd.f32 %v3756_v40, %v1824_v49  ;;  %v1822_v1 = vadd.f32 %v1721_v14, %v5198_v30  ;;  %v1960_v13 = vpop.f32.mrf.mxu0 }
 0x187   : > { %v3725_v42 = vpop.f32.mrf.mxu1 }
 0x188   : > { %v5337_v17 = vadd.f32 %v1947_v18, %v1822_v1  ;;  %v1827_v52 = vadd.f32 %v3725_v42, %v5203_v62  ;;  %v3760_v61 = vpop.f32.mrf.mxu0 }
 0x189   : > { %v1734_v24 = vpop.f32.mrf.mxu1 }
 0x18a   : > { %v5340_v19 = vadd.f32 %v3759_v6, %v1827_v52  ;;  %v1825_v0 = vadd.f32 %v1734_v24, %v5206_v34  ;;  %v1963_v54 = vpop.f32.mrf.mxu0 }
 0x18b   : > { %v3726_v26 = vpop.f32.mrf.mxu1 }
 0x18c   : > { %v5343_v25 = vadd.f32 %v1960_v13, %v1825_v0  ;;  %v1828_v12 = vadd.f32 %v3726_v26, %v5213_v35  ;;  %v3763_v32 = vpop.f32.mrf.mxu0 }
 0x18d   : > { %v1737_v30 = vpop.f32.mrf.mxu1 }
 0x18e   : > { %v5346_v37 = vadd.f32 %v3760_v61, %v1828_v12  ;;  %v1826_v48 = vadd.f32 %v1737_v30, %v5222_v39  ;;  %v1976_v46 = vpop.f32.mrf.mxu0 }
 0x18f   : > { %v3729_v62 = vpop.f32.mrf.mxu1 }
 0x190   : > { %v5349_v28 = vadd.f32 %v1963_v54, %v1826_v48  ;;  %v1831_v21 = vadd.f32 %v3729_v62, %v5227_v23  ;;  %v3764_v38 = vpop.f32.mrf.mxu0 }
 0x191   : > { %v1750_v34 = vpop.f32.mrf.mxu1 }
 0x192   : > { %v5352_v22 = vadd.f32 %v3763_v32, %v1831_v21  ;;  %v1829_v27 = vadd.f32 %v1750_v34, %v5230_v56  ;;  %v1979_v3 = vpop.f32.mrf.mxu0 }
 0x193   : > { %v3730_v35 = vpop.f32.mrf.mxu1 }
 0x194   : > { %v5355_v63 = vadd.f32 %v1976_v46, %v1829_v27  ;;  %v1832_v40 = vadd.f32 %v3730_v35, %v5239_v43  ;;  %v3767_v9 = vpop.f32.mrf.mxu0 }
 0x195   : > { %v1753_v39 = vpop.f32.mrf.mxu1 }
 0x196   : > { %v5358_v53 = vadd.f32 %v3764_v38, %v1832_v40  ;;  %v1830_v18 = vadd.f32 %v1753_v39, %v5244_v59  ;;  %v1992_v36 = vpop.f32.mrf.mxu0 }
 0x197   : > { %v3733_v23 = vpop.f32.mrf.mxu1 }
 0x198   : > { %5897 = vst [vmem:[#allocation16_spill] sm:$0xff] %v5358_v53  ;;  %v5361_v49 = vadd.f32 %v1979_v3, %v1830_v18  ;;  %v1835_v6 = vadd.f32 %v3733_v23, %v5250_v20  ;;  %v3768_v14 = vpop.f32.mrf.mxu0 }
 0x199   : > { %v1766_v56 = vpop.f32.mrf.mxu1 }
 0x19a   : > { %5898 = vst [vmem:[#allocation14_spill] sm:$0xff] %v5361_v49  ;;  %v5364_v1 = vadd.f32 %v3767_v9, %v1835_v6  ;;  %v1833_v13 = vadd.f32 %v1766_v56, %v5253_v55  ;;  %v1995_v42 = vpop.f32.mrf.mxu0 }
 0x19b   : > { %v3734_v43 = vpop.f32.mrf.mxu1 }
 0x19c   : > { %5899 = vst [vmem:[#allocation18_spill] sm:$0xff] %v5364_v1  ;;  %v5367_v52 = vadd.f32 %v1992_v36, %v1833_v13  ;;  %v1836_v61 = vadd.f32 %v3734_v43, %v5264_v10  ;;  %v3771_v24 = vpop.f32.mrf.mxu0 }
 0x19d   : > { %v1769_v59 = vpop.f32.mrf.mxu1 }
 0x19e   : > { %5900 = vst [vmem:[#allocation20_spill] sm:$0xff] %v5367_v52  ;;  %v5370_v0 = vadd.f32 %v3768_v14, %v1836_v61  ;;  %v1834_v54 = vadd.f32 %v1769_v59, %v5271_v44  ;;  %v2008_v26 = vpop.f32.mrf.mxu0 }
 0x19f   : > { %v3737_v20 = vpop.f32.mrf.mxu1 }
 0x1a0   : > { %5901 = vst [vmem:[#allocation22_spill] sm:$0xff] %v5370_v0  ;;  %v5373_v12 = vadd.f32 %v1995_v42, %v1834_v54  ;;  %v1839_v32 = vadd.f32 %v3737_v20, %v5278_v57  ;;  %v3772_v30 = vpop.f32.mrf.mxu0 }
 0x1a1   : > { %v1782_v55 = vpop.f32.mrf.mxu1 }
 0x1a2   : > { %5902 = vst [vmem:[#allocation26_spill] sm:$0xff] %v5373_v12  ;;  %v5376_v48 = vadd.f32 %v3771_v24, %v1839_v32  ;;  %v1837_v46 = vadd.f32 %v1782_v55, %v5281_v16  ;;  %v2011_v62 = vpop.f32.mrf.mxu0 }
 0x1a3   : > { %v3738_v10 = vpop.f32.mrf.mxu1 }
 0x1a4   : > { %5903 = vst [vmem:[#allocation31_spill] sm:$0xff] %v5376_v48  ;;  %v5379_v21 = vadd.f32 %v2008_v26, %v1837_v46  ;;  %v1840_v38 = vadd.f32 %v3738_v10, %v5285_v31  ;;  %v3775_v34 = vpop.f32.mrf.mxu0 }
 0x1a5   : > { %v1785_v44 = vpop.f32.mrf.mxu1 }
 0x1a6   : > { %5904 = vst [vmem:[#allocation12_spill] sm:$0xff] %v5379_v21  ;;  %v5382_v27 = vadd.f32 %v3772_v30, %v1840_v38  ;;  %v1838_v3 = vadd.f32 %v1785_v44, %v5289_v7  ;;  %v2024_v35 = vpop.f32.mrf.mxu0 }
 0x1a7   : > { %v3741_v57 = vpop.f32.mrf.mxu1 }
 0x1a8   : > { %5905 = vst [vmem:[#allocation17_spill] sm:$0xff] %v5382_v27  ;;  %v5385_v40 = vadd.f32 %v2011_v62, %v1838_v3  ;;  %v1843_v9 = vadd.f32 %v3741_v57, %v5292_v51  ;;  %v3776_v39 = vpop.f32.mrf.mxu0 }
 0x1a9   : > { %v1798_v16 = vpop.f32.mrf.mxu1 }
 0x1aa   : > { %5906 = vst [vmem:[#allocation19_spill] sm:$0xff] %v5385_v40  ;;  %v5388_v18 = vadd.f32 %v3775_v34, %v1843_v9  ;;  %v1841_v36 = vadd.f32 %v1798_v16, %v5295_v50  ;;  %v2027_v23 = vpop.f32.mrf.mxu0 }
 0x1ab   : > { %v3742_v31 = vpop.f32.mrf.mxu1 }
 0x1ac   : > { %5907 = vst [vmem:[#allocation21_spill] sm:$0xff] %v5388_v18  ;;  %v5391_v6 = vadd.f32 %v2024_v35, %v1841_v36  ;;  %v1844_v14 = vadd.f32 %v3742_v31, %v5298_v2  ;;  %v5394_v56 = vpop.f32.mrf.mxu0 }
 0x1ad   : > { %v1801_v7 = vpop.f32.mrf.mxu1 }
 0x1ae   : > { %5908 = vst [vmem:[#allocation24_spill] sm:$0xff] %v5391_v6  ;;  %v5396_v13 = vadd.f32 %v3776_v39, %v1844_v14  ;;  %v1842_v42 = vadd.f32 %v1801_v7, %v5301_v47  ;;  %v5399_v51 = vpop.f32.mrf.mxu0 }
 0x1af   : > { %v3781_v43 = vpop.f32.mrf.mxu1 }
 0x1b0   : > { %5909 = vst [vmem:[#allocation29_spill] sm:$0xff] %v5396_v13  ;;  %v5401_v61 = vadd.f32 %v2027_v23, %v1842_v42  ;;  %v5403_v24 = vpop.f32.mrf.mxu0 }
 0x1b1   : > { %v2122_v50 = vpop.f32.mrf.mxu1 }
 0x1b2   : > { %5910 = vst [vmem:[#allocation32_spill] sm:$0xff] %v5401_v61  ;;  %v5405_v59 = vpop.f32.mrf.mxu0 }
 0x1b3   : > { %v5407_v54 = vpop.f32.mrf.mxu1 }
 0x1b4   : > { %v5409_v2 = vpop.f32.mrf.mxu0 }
 0x1b5   : > { %v5411_v26 = vpop.f32.mrf.mxu1 }
 0x1b6   : > { %v5413_v20 = vpop.f32.mrf.mxu0 }
 0x1b7   : > { %v5415_v32 = vpop.f32.mrf.mxu1 }
 0x1b8   : > { %v5417_v47 = vpop.f32.mrf.mxu0 }
 0x1b9   : > { %v5419_v30 = vpop.f32.mrf.mxu1 }
 0x1ba   : > { %v5421_v55 = vpop.f32.mrf.mxu0 }
 0x1bb   : > { %v5423_v46 = vpop.f32.mrf.mxu1 }
 0x1bc   : > { %v5425_v62 = vpop.f32.mrf.mxu0 }
 0x1bd   : > { %v5427_v10 = vpop.f32.mrf.mxu1 }
 0x1be   : > { %v5429_v38 = vpop.f32.mrf.mxu0 }
 0x1bf   : > { %v5431_v34 = vpop.f32.mrf.mxu1 }
 0x1c0   : > { %v5433_v44 = vpop.f32.mrf.mxu0 }
 0x1c1   : > { %v5435_v3 = vpop.f32.mrf.mxu1 }
 0x1c2   : > { %v5437_v35 = vpop.f32.mrf.mxu0 }
 0x1c3   : > { %v5439_v57 = vpop.f32.mrf.mxu1 }
 0x1c4   : > { %v5441_v9 = vpop.f32.mrf.mxu0 }
 0x1c5   : > { %v5443_v39 = vpop.f32.mrf.mxu1 }
 0x1c6   : > { %v5445_v16 = vpop.f32.mrf.mxu0 }
 0x1c7   : > { %v5447_v36 = vpop.f32.mrf.mxu1 }
 0x1c8   : > { %v5449_v23 = vpop.f32.mrf.mxu0 }
 0x1c9   : > { %v5451_v31 = vpop.f32.mrf.mxu1 }
 0x1ca   : > { %v5453_v14 = vpop.f32.mrf.mxu0 }
 0x1cb   : > { %v5455_v7 = vpop.f32.mrf.mxu1 }
 0x1cc   : > { %v5457_v42 = vpop.f32.mrf.mxu0 }
 0x1cd   : > { %v5459_v61 = vpop.f32.mrf.mxu1 }
 0x1ce   : > { %v5461_v13 = vpop.f32.mrf.mxu0 }
 0x1cf   : > { %5911 = vst [vmem:[#allocation9_spill] sm:$0xff] %v5461_v13  ;;  %v5463_v6 = vpop.f32.mrf.mxu1 }
 0x1d0   : > { %v5465_v18 = vpop.f32.mrf.mxu0 }
 0x1d1   : > { %5912 = vst [vmem:[#allocation27_spill] sm:$0xff] %v5465_v18  ;;  %v5467_v40 = vpop.f32.mrf.mxu1 }
 0x1d2   : > { %v5469_v27 = vpop.f32.mrf.mxu0 }
 0x1d3   : > { %5913 = vst [vmem:[#allocation23_spill] sm:$0xff] %v5469_v27  ;;  %v5471_v21 = vpop.f32.mrf.mxu1 }
 0x1d4   : > { %5914 = vst [vmem:[#allocation25_spill] sm:$0xff] %v5471_v21  ;;  %v5473_v48 = vpop.f32.mrf.mxu0 }
 0x1d5   : > { %5915 = vst [vmem:[#allocation28_spill] sm:$0xff] %v5473_v48  ;;  %v5475_v12 = vpop.f32.mrf.mxu1 }
 0x1d6   : > { %5916 = vst [vmem:[#allocation30_spill] sm:$0xff] %v5475_v12  ;;  %v5477_v0 = vpop.f32.mrf.mxu0 }
 0x1d7   : > { %5917 = vst [vmem:[#allocation15_spill] sm:$0xff] %v5477_v0  ;;  %v5479_v52 = vpop.f32.mrf.mxu1 }
 0x1d8   : > { %5918 = vst [vmem:[#allocation10_spill] sm:$0xff] %v5479_v52  ;;  %v5481_v1 = vpop.f32.mrf.mxu0 }
 0x1d9   : > { %5919 = vst [vmem:[#allocation11_spill] sm:$0xff] %v5481_v1  ;;  %v5483_v49 = vpop.f32.mrf.mxu1 }
 0x1da   : > { %5920 = vst [vmem:[#allocation13_spill] sm:$0xff] %v5483_v49  ;;  %v5485_v13 = vpop.f32.mrf.mxu0 }
 0x1db   : > { %5921 = vst [vmem:[#allocation33_spill] sm:$0xff] %v5485_v13  ;;  %v5487_v18 = vpop.f32.mrf.mxu1 }
 0x1dc   : > { %5922 = vst [vmem:[#allocation34_spill] sm:$0xff] %v5487_v18  ;;  %v5489_v53 = vpop.f32.mrf.mxu0 }
 0x1dd   : > { %5923 = vst [vmem:[#allocation35_spill] sm:$0xff] %v5489_v53  ;;  %v5491_v27 = vpop.f32.mrf.mxu1 }
 0x1de   : > { %5924 = vst [vmem:[#allocation36_spill] sm:$0xff] %v5491_v27  ;;  %v5493_v48 = vpop.f32.mrf.mxu0 }
 0x1df   : > { %5925 = vst [vmem:[#allocation37_spill] sm:$0xff] %v5493_v48  ;;  %v5495_v12 = vpop.f32.mrf.mxu1 }
 0x1e0   : > { %5926 = vst [vmem:[#allocation38_spill] sm:$0xff] %v5495_v12  ;;  %v5497_v0 = vpop.f32.mrf.mxu0 }
 0x1e1   : > { %5927 = vst [vmem:[#allocation39_spill] sm:$0xff] %v5497_v0  ;;  %v5499_v52 = vpop.f32.mrf.mxu1  ;;  %v2251_v0 = vadd.f32 %v3781_v43, %v5304_v29 }
 0x1e2   : > { %5928 = vst [vmem:[#allocation40_spill] sm:$0xff] %v5499_v52  ;;  %v5501_v1 = vpop.f32.mrf.mxu0 }
 0x1e3   : > { %5929 = vst [vmem:[#allocation41_spill] sm:$0xff] %v5501_v1  ;;  %v5503_v49 = vpop.f32.mrf.mxu1 }
 0x1e4   : > { %5930 = vst [vmem:[#allocation42_spill] sm:$0xff] %v5503_v49  ;;  %v5505_v13 = vpop.f32.mrf.mxu0 }
 0x1e5   : > { %5931 = vst [vmem:[#allocation43_spill] sm:$0xff] %v5505_v13  ;;  %v5507_v18 = vpop.f32.mrf.mxu1  ;;  %v2249_v13 = vadd.f32 %v2122_v50, %v5307_v15  ;;  %v2255_v50 = vadd.f32 %v5415_v32, %v5316_v41 }
 0x1e6   : > { %5932 = vst [vmem:[#allocation44_spill] sm:$0xff] %v5507_v18  ;;  %v5509_v53 = vpop.f32.mrf.mxu0 }
 0x1e7   : > { %5933 = vst [vmem:[#allocation45_spill] sm:$0xff] %v5509_v53  ;;  %v5511_v27 = vpop.f32.mrf.mxu1  ;;  %v2455_v53 = vadd.f32 %v5394_v56, %v2251_v0  ;;  %v2453_v43 = vadd.f32 %v5399_v51, %v2249_v13  ;;  %v2253_v13 = vadd.f32 %v5419_v30, %v5319_v5  ;;  %v2459_v41 = vadd.f32 %v5409_v2, %v2255_v50 }
 0x1e8   : > { %5934 = vst [vmem:[#allocation46_spill] sm:$0xff] %v5511_v27  ;;  %v5513_v21 = vpop.f32.mrf.mxu0  ;;  %v2256_v5 = vadd.f32 %v5423_v46, %v5322_v45  ;;  %v2259_v2 = vadd.f32 %v5431_v34, %v5328_v11 }
 0x1e9   : > { %5935 = vst [vmem:[#allocation47_spill] sm:$0xff] %v5513_v21  ;;  %v5515_v48 = vpop.f32.mrf.mxu1  ;;  %v2252_v21 = vadd.f32 %v5407_v54, %v5310_v58 }
 0x1ea   : > { %5936 = vst [vmem:[#allocation48_spill] sm:$0xff] %v5515_v48  ;;  %v5518_v12 = vpop.f32.mrf.mxu0  ;;  %v2463_v34 = vadd.f32 %v5425_v62, %v2259_v2  ;;  %v2263_v2 = vadd.f32 %v5447_v36, %v5340_v19 }
 0x1eb   : > { %5937 = vst [vmem:[#allocation49_spill] sm:$0xff] %v5518_v12  ;;  %v5520_v52 = vpop.f32.mrf.mxu1  ;;  %v2250_v12 = vadd.f32 %v5411_v26, %v5313_v4  ;;  %v2456_v15 = vadd.f32 %v5403_v24, %v2252_v21 }
 0x1ec   : > { %5938 = vst [vmem:[#allocation50_spill] sm:$0xff] %v5520_v52  ;;  %v3883_v1 = vpop.f32.mrf.mxu0 }
 0x1ed   : > { %v5526_v18 = vpop.f32.mrf.mxu1  ;;  %v2454_v54 = vadd.f32 %v5405_v59, %v2250_v12  ;;  %v2254_v12 = vadd.f32 %v5427_v10, %v5325_v8  ;;  %v2457_v59 = vadd.f32 %v5413_v20, %v2253_v13  ;;  %v2460_v8 = vadd.f32 %v5417_v47, %v2256_v5 }
 0x1ee   : > { %5939 = vst [vmem:[#allocation51_spill] sm:$0xff] %v5526_v18  ;;  %v2762_v48 = vpop.f32.mrf.mxu0  ;;  %v2260_v13 = vadd.f32 %v5439_v57, %v5334_v33 }
 0x1ef   : > { %v3849_v29 = vpop.f32.mrf.mxu1  ;;  %v2458_v20 = vadd.f32 %v5421_v55, %v2254_v12 }
 0x1f0   : > { %v2681_v52 = vadd.f32 %v3849_v29, %v2455_v53  ;;  %v3884_v27 = vpop.f32.mrf.mxu0 }
 0x1f1   : > { %v2552_v49 = vpop.f32.mrf.mxu1 }
 0x1f2   : > { %v2891_v0 = vadd.f32 %v3883_v1, %v2681_v52  ;;  %v2679_v56 = vadd.f32 %v2552_v49, %v2453_v43  ;;  %v2765_v18 = vpop.f32.mrf.mxu0 }
 0x1f3   : > { %v3850_v58 = vpop.f32.mrf.mxu1 }
 0x1f4   : > { %2923 = vst [vmem:[%s5541_s10 + $0x10] sm:$0xff] %v2891_v0  ;;  %v2889_v4 = vadd.f32 %v2762_v48, %v2679_v56  ;;  %v2682_v53 = vadd.f32 %v3850_v58, %v2456_v15  ;;  %v3887_v21 = vpop.f32.mrf.mxu0  ;;  %v2993_v10 = vmul.f32 %v2891_v0, %v2891_v0 }
 0x1f5   : > { %v2555_v51 = vpop.f32.mrf.mxu1 }
 0x1f6   : > { %2921 = vst [vmem:[%s5541_s10] sm:$0xff] %v2889_v4  ;;  %v2892_v49 = vadd.f32 %v3884_v27, %v2682_v53  ;;  %v2680_v1 = vadd.f32 %v2555_v51, %v2454_v54  ;;  %v2778_v52 = vpop.f32.mrf.mxu0  ;;  %v2991_v27 = vmul.f32 %v2889_v4, %v2889_v4  ;;  %v2257_v54 = vadd.f32 %v5435_v3, %v5331_v60 }
 0x1f7   : > { %v3853_v24 = vpop.f32.mrf.mxu1 }
 0x1f8   : > { %2924 = vst [vmem:[%s5541_s10 + $0x18] sm:$0xff] %v2892_v49  ;;  %v2890_v48 = vadd.f32 %v2765_v18, %v2680_v1  ;;  %v2685_v26 = vadd.f32 %v3853_v24, %v2459_v41  ;;  %v3888_v32 = vpop.f32.mrf.mxu0  ;;  %v2994_v53 = vmul.f32 %v2892_v49, %v2892_v49  ;;  %v2258_v41 = vadd.f32 %v5443_v39, %v5337_v17 }
 0x1f9   : > { %v2568_v30 = vpop.f32.mrf.mxu1  ;;  %v2461_v12 = vadd.f32 %v5429_v38, %v2257_v54  ;;  %v2464_v24 = vadd.f32 %v5433_v44, %v2260_v13  ;;  %v2262_v13 = vadd.f32 %v5459_v61, %v5349_v28 }
 0x1fa   : > { %2922 = vst [vmem:[%s5541_s10 + $0x8] sm:$0xff] %v2890_v48  ;;  %v2953_v29 = vadd.f32 %v2890_v48, %v2889_v4  ;;  %v2992_v43 = vmul.f32 %v2890_v48, %v2890_v48  ;;  %v2895_v45 = vadd.f32 %v3887_v21, %v2685_v26  ;;  %v2683_v46 = vadd.f32 %v2568_v30, %v2457_v59  ;;  %v2781_v15 = vpop.f32.mrf.mxu0 }
 0x1fb   : > { %v3854_v18 = vpop.f32.mrf.mxu1 }
 0x1fc   : > { %v2954_v50 = vadd.f32 %v2953_v29, %v2891_v0  ;;  %v3023_v56 = vadd.f32 %v2992_v43, %v2991_v27  ;;  %2927 = vst [vmem:[%s5541_s10 + $0x30] sm:$0xff] %v2895_v45  ;;  %v2893_v58 = vadd.f32 %v2778_v52, %v2683_v46  ;;  %v3891_v11 = vpop.f32.mrf.mxu0  ;;  %v2686_v4 = vadd.f32 %v3854_v18, %v2460_v8 }
 0x1fd   : > { %v2571_v47 = vpop.f32.mrf.mxu1  ;;  %v2261_v27 = vadd.f32 %v5451_v31, %v5343_v25  ;;  %v2997_v44 = vmul.f32 %v2895_v45, %v2895_v45  ;;  %v2264_v8 = vadd.f32 %v5455_v7, %v5346_v37 }
 0x1fe   : > { %v3024_v21 = vadd.f32 %v3023_v56, %v2993_v10  ;;  %2925 = vst [vmem:[%s5541_s10 + $0x20] sm:$0xff] %v2893_v58  ;;  %v2955_v55 = vadd.f32 %v2954_v50, %v2892_v49  ;;  %v2684_v0 = vadd.f32 %v2571_v47, %v2458_v20  ;;  %v2794_v51 = vpop.f32.mrf.mxu0  ;;  %v2995_v62 = vmul.f32 %v2893_v58, %v2893_v58 }
 0x1ff   : > { %v2896_v1 = vadd.f32 %v3888_v32, %v2686_v4  ;;  %v3857_v52 = vpop.f32.mrf.mxu1  ;;  %v2462_v32 = vadd.f32 %v5437_v35, %v2258_v41  ;;  %v2467_v50 = vadd.f32 %v5441_v9, %v2263_v2  ;;  %v2468_v54 = vadd.f32 %v5449_v23, %v2264_v8  ;;  %v5947_v8 = vld [vmem:[#allocation10_spill] sm:$0xff] }
 0x200   : > { %v2956_v60 = vadd.f32 %v2955_v55, %v2893_v58  ;;  %v3025_v3 = vadd.f32 %v3024_v21, %v2994_v53  ;;  %v2894_v5 = vadd.f32 %v2781_v15, %v2684_v0  ;;  %v2689_v33 = vadd.f32 %v3857_v52, %v2463_v34  ;;  %v3892_v57 = vpop.f32.mrf.mxu0 }
 0x201   : > { %2928 = vst [vmem:[%s5541_s10 + $0x38] sm:$0xff] %v2896_v1  ;;  %v2584_v49 = vpop.f32.mrf.mxu1  ;;  %v2998_v35 = vmul.f32 %v2896_v1, %v2896_v1  ;;  %v2267_v4 = vadd.f32 %v5463_v6, %v5352_v22  ;;  %v2466_v52 = vadd.f32 %v5453_v14, %v2262_v13  ;;  %v5952_v13 = vld [vmem:[#allocation34_spill] sm:$0xff] }
 0x202   : > { %v3026_v59 = vadd.f32 %v3025_v3, %v2995_v62  ;;  %2926 = vst [vmem:[%s5541_s10 + $0x28] sm:$0xff] %v2894_v5  ;;  %v2957_v48 = vadd.f32 %v2956_v60, %v2894_v5  ;;  %v2996_v26 = vmul.f32 %v2894_v5, %v2894_v5  ;;  %v2899_v17 = vadd.f32 %v3891_v11, %v2689_v33  ;;  %v2797_v39 = vpop.f32.mrf.mxu0  ;;  %v5940_v3 = vld [vmem:[#allocation16_spill] sm:$0xff]  ;;  %v5941_v5 = vld [vmem:[#allocation25_spill] sm:$0xff] }
 0x203   : > { %v2687_v38 = vadd.f32 %v2584_v49, %v2461_v12  ;;  %v3858_v30 = vpop.f32.mrf.mxu1  ;;  %v2471_v60 = vadd.f32 %v5457_v42, %v2267_v4  ;;  %v2268_v33 = vadd.f32 %v5941_v5, %v5940_v3 }
 0x204   : > { %v2958_v29 = vadd.f32 %v2957_v48, %v2895_v45  ;;  %v3027_v43 = vadd.f32 %v3026_v59, %v2996_v26  ;;  %2931 = vst [vmem:[%s5541_s10 + $0x50] sm:$0xff] %v2899_v17  ;;  %v2690_v46 = vadd.f32 %v3858_v30, %v2464_v24  ;;  %v3895_v15 = vpop.f32.mrf.mxu0  ;;  %v2465_v45 = vadd.f32 %v5445_v16, %v2261_v27  ;;  %v5942_v59 = vld [vmem:[#allocation9_spill] sm:$0xff]  ;;  %v5943_v26 = vld [vmem:[#allocation14_spill] sm:$0xff] }
 0x205   : > { %v2897_v20 = vadd.f32 %v2794_v51, %v2687_v38  ;;  %v2587_v18 = vpop.f32.mrf.mxu1  ;;  %v2265_v51 = vadd.f32 %v5467_v40, %v5355_v63  ;;  %v3001_v23 = vmul.f32 %v2899_v17, %v2899_v17 }
 0x206   : > { %v3028_v19 = vadd.f32 %v3027_v43, %v2997_v44  ;;  %v2959_v36 = vadd.f32 %v2958_v29, %v2896_v1  ;;  %v2900_v10 = vadd.f32 %v3892_v57, %v2690_v46  ;;  %v2688_v25 = vadd.f32 %v2587_v18, %v2462_v32  ;;  %v2810_v31 = vpop.f32.mrf.mxu0  ;;  %v5945_v44 = vld [vmem:[#allocation27_spill] sm:$0xff] }
 0x207   : > { %2929 = vst [vmem:[%s5541_s10 + $0x40] sm:$0xff] %v2897_v20  ;;  %v3861_v56 = vpop.f32.mrf.mxu1  ;;  %v2999_v11 = vmul.f32 %v2897_v20, %v2897_v20  ;;  %v2469_v48 = vadd.f32 %v5942_v59, %v2265_v51  ;;  %v2472_v29 = vadd.f32 %v5945_v44, %v2268_v33  ;;  %v5961_v44 = vld [vmem:[#allocation12_spill] sm:$0xff] }
 0x208   : > { %v2960_v58 = vadd.f32 %v2959_v36, %v2897_v20  ;;  %v3029_v34 = vadd.f32 %v3028_v19, %v2998_v35  ;;  %2932 = vst [vmem:[%s5541_s10 + $0x58] sm:$0xff] %v2900_v10  ;;  %v2898_v37 = vadd.f32 %v2797_v39, %v2688_v25  ;;  %v3896_v7 = vpop.f32.mrf.mxu0  ;;  %v2693_v9 = vadd.f32 %v3861_v56, %v2467_v50  ;;  %v5948_v50 = vld [vmem:[#allocation23_spill] sm:$0xff]  ;;  %v5949_v56 = vld [vmem:[#allocation20_spill] sm:$0xff] }
 0x209   : > { %v2600_v47 = vpop.f32.mrf.mxu1  ;;  %v3002_v63 = vmul.f32 %v2900_v10, %v2900_v10 }
 0x20a   : > { %v3030_v53 = vadd.f32 %v3029_v34, %v2999_v11  ;;  %2930 = vst [vmem:[%s5541_s10 + $0x48] sm:$0xff] %v2898_v37  ;;  %v2961_v16 = vadd.f32 %v2960_v58, %v2898_v37  ;;  %v3000_v21 = vmul.f32 %v2898_v37, %v2898_v37  ;;  %v2691_v55 = vadd.f32 %v2600_v47, %v2465_v45  ;;  %v2813_v0 = vpop.f32.mrf.mxu0  ;;  %v5950_v58 = vld [vmem:[#allocation13_spill] sm:$0xff] }
 0x20b   : > { %v2903_v41 = vadd.f32 %v3895_v15, %v2693_v9  ;;  %v3862_v62 = vpop.f32.mrf.mxu1  ;;  %v5946_v15 = vld [vmem:[#allocation18_spill] sm:$0xff]  ;;  %v2269_v11 = vadd.f32 %v5950_v58, %v5949_v56 }
 0x20c   : > { %v2962_v28 = vadd.f32 %v2961_v16, %v2899_v17  ;;  %v3031_v61 = vadd.f32 %v3030_v53, %v3000_v21  ;;  %v2901_v1 = vadd.f32 %v2810_v31, %v2691_v55  ;;  %v2694_v22 = vadd.f32 %v3862_v62, %v2468_v54  ;;  %v3899_v6 = vpop.f32.mrf.mxu0  ;;  %v5944_v17 = vld [vmem:[#allocation30_spill] sm:$0xff]  ;;  %v5953_v21 = vld [vmem:[#allocation28_spill] sm:$0xff] }
 0x20d   : > { %2935 = vst [vmem:[%s5541_s10 + $0x70] sm:$0xff] %v2903_v41  ;;  %v2603_v57 = vpop.f32.mrf.mxu1  ;;  %v2266_v39 = vadd.f32 %v5944_v17, %v5943_v26  ;;  %v2271_v35 = vadd.f32 %v5947_v8, %v5946_v15  ;;  %v5951_v54 = vld [vmem:[#allocation22_spill] sm:$0xff]  ;;  %v3005_v9 = vmul.f32 %v2903_v41, %v2903_v41 }
 0x20e   : > { %v3032_v40 = vadd.f32 %v3031_v61, %v3001_v23  ;;  %2933 = vst [vmem:[%s5541_s10 + $0x60] sm:$0xff] %v2901_v1  ;;  %v2963_v12 = vadd.f32 %v2962_v28, %v2900_v10  ;;  %v2904_v24 = vadd.f32 %v3896_v7, %v2694_v22  ;;  %v2826_v49 = vpop.f32.mrf.mxu0  ;;  %v2692_v14 = vadd.f32 %v2603_v57, %v2466_v52  ;;  %v5954_v22 = vld [vmem:[#allocation15_spill] sm:$0xff]  ;;  %v5955_v52 = vld [vmem:[#allocation26_spill] sm:$0xff] }
 0x20f   : > { %v3865_v42 = vpop.f32.mrf.mxu1  ;;  %v3003_v2 = vmul.f32 %v2901_v1, %v2901_v1  ;;  %v2470_v45 = vadd.f32 %v5948_v50, %v2266_v39  ;;  %v2272_v4 = vadd.f32 %v5952_v13, %v5951_v54  ;;  %v2475_v55 = vadd.f32 %v5953_v21, %v2271_v35  ;;  %v5957_v57 = vld [vmem:[#allocation11_spill] sm:$0xff]  ;;  %v5959_v26 = vld [vmem:[#allocation38_spill] sm:$0xff]  ;;  %v5963_v35 = vld [vmem:[#allocation17_spill] sm:$0xff] }
 0x210   : > { %v2964_v32 = vadd.f32 %v2963_v12, %v2901_v1  ;;  %v3033_v27 = vadd.f32 %v3032_v40, %v3002_v63  ;;  %2936 = vst [vmem:[%s5541_s10 + $0x78] sm:$0xff] %v2904_v24  ;;  %v2697_v38 = vadd.f32 %v3865_v42, %v2471_v60  ;;  %v3900_v30 = vpop.f32.mrf.mxu0  ;;  %v2902_v43 = vadd.f32 %v2813_v0, %v2692_v14  ;;  %v5956_v60 = vld [vmem:[#allocation36_spill] sm:$0xff]  ;;  %v5965_v50 = vld [vmem:[#allocation35_spill] sm:$0xff]  ;;  %v5966_v13 = vld [vmem:[#allocation37_spill] sm:$0xff] }
 0x211   : > { %v2616_v46 = vpop.f32.mrf.mxu1  ;;  %v3006_v62 = vmul.f32 %v2904_v24, %v2904_v24  ;;  %v2270_v3 = vadd.f32 %v5956_v60, %v5955_v52  ;;  %v2476_v63 = vadd.f32 %v5957_v57, %v2272_v4  ;;  %v5972_v57 = vld [vmem:[#allocation41_spill] sm:$0xff] }
 0x212   : > { %v3034_v20 = vadd.f32 %v3033_v27, %v3003_v2  ;;  %v2907_v18 = vadd.f32 %v3899_v6, %v2697_v38  ;;  %v2695_v19 = vadd.f32 %v2616_v46, %v2469_v48  ;;  %v2829_v36 = vpop.f32.mrf.mxu0  ;;  %2934 = vst [vmem:[%s5541_s10 + $0x68] sm:$0xff] %v2902_v43  ;;  %v2965_v10 = vadd.f32 %v2964_v32, %v2902_v43  ;;  %v5958_v48 = vld [vmem:[#allocation31_spill] sm:$0xff]  ;;  %v5960_v38 = vld [vmem:[#allocation33_spill] sm:$0xff] }
 0x213   : > { %v3004_v25 = vmul.f32 %v2902_v43, %v2902_v43  ;;  %v3866_v31 = vpop.f32.mrf.mxu1  ;;  %v2473_v6 = vadd.f32 %v5954_v22, %v2269_v11  ;;  %v5971_v22 = vld [vmem:[#allocation46_spill] sm:$0xff] }
 0x214   : > { %2939 = vst [vmem:[%s5541_s10 + $0x90] sm:$0xff] %v2907_v18  ;;  %v2905_v34 = vadd.f32 %v2826_v49, %v2695_v19  ;;  %v2698_v37 = vadd.f32 %v3866_v31, %v2472_v29  ;;  %v3903_v7 = vpop.f32.mrf.mxu0  ;;  %v2966_v47 = vadd.f32 %v2965_v10, %v2903_v41  ;;  %v5962_v29 = vld [vmem:[#allocation40_spill] sm:$0xff] }
 0x215   : > { %v3035_v53 = vadd.f32 %v3034_v20, %v3004_v25  ;;  %v2619_v16 = vpop.f32.mrf.mxu1  ;;  %v2273_v43 = vadd.f32 %v5962_v29, %v5961_v44  ;;  %v5964_v20 = vld [vmem:[#allocation42_spill] sm:$0xff] }
 0x216   : > { %2937 = vst [vmem:[%s5541_s10 + $0x80] sm:$0xff] %v2905_v34  ;;  %v2908_v0 = vadd.f32 %v3900_v30, %v2698_v37  ;;  %v2696_v51 = vadd.f32 %v2619_v16, %v2470_v45  ;;  %v2842_v23 = vpop.f32.mrf.mxu0  ;;  %v2967_v61 = vadd.f32 %v2966_v47, %v2904_v24  ;;  %v3007_v12 = vmul.f32 %v2905_v34, %v2905_v34  ;;  %v5968_v47 = vld [vmem:[#allocation44_spill] sm:$0xff] }
 0x217   : > { %v3036_v28 = vadd.f32 %v3035_v53, %v3005_v9  ;;  %v3869_v1 = vpop.f32.mrf.mxu1  ;;  %v2275_v24 = vadd.f32 %v5959_v26, %v5958_v48  ;;  %v2474_v30 = vadd.f32 %v5960_v38, %v2270_v3  ;;  %v2276_v19 = vadd.f32 %v5964_v20, %v5963_v35  ;;  %v5967_v9 = vld [vmem:[#allocation19_spill] sm:$0xff]  ;;  %v5977_v38 = vld [vmem:[#allocation50_spill] sm:$0xff]  ;;  %v5978_v20 = vld [vmem:[#allocation45_spill] sm:$0xff] }
 0x218   : > { %2940 = vst [vmem:[%s5541_s10 + $0x98] sm:$0xff] %v2908_v0  ;;  %v2906_v41 = vadd.f32 %v2829_v36, %v2696_v51  ;;  %v2701_v5 = vadd.f32 %v3869_v1, %v2475_v55  ;;  %v3904_v33 = vpop.f32.mrf.mxu0  ;;  %v2968_v40 = vadd.f32 %v2967_v61, %v2905_v34  ;;  %v3009_v36 = vmul.f32 %v2907_v18, %v2907_v18  ;;  %v5969_v55 = vld [vmem:[#allocation39_spill] sm:$0xff]  ;;  %v5970_v1 = vld [vmem:[#allocation21_spill] sm:$0xff] }
 0x219   : > { %v3037_v49 = vadd.f32 %v3036_v28, %v3006_v62  ;;  %v2632_v59 = vpop.f32.mrf.mxu1  ;;  %v2479_v45 = vadd.f32 %v5965_v50, %v2275_v24  ;;  %v3010_v34 = vmul.f32 %v2908_v0, %v2908_v0  ;;  %v2477_v4 = vadd.f32 %v5966_v13, %v2273_v43 }
 0x21a   : > { %2938 = vst [vmem:[%s5541_s10 + $0x88] sm:$0xff] %v2906_v41  ;;  %v3008_v17 = vmul.f32 %v2906_v41, %v2906_v41  ;;  %v2911_v39 = vadd.f32 %v3903_v7, %v2701_v5  ;;  %v2699_v14 = vadd.f32 %v2632_v59, %v2473_v6  ;;  %v2845_v42 = vpop.f32.mrf.mxu0  ;;  %v2969_v2 = vadd.f32 %v2968_v40, %v2906_v41  ;;  %v5973_v40 = vld [vmem:[#allocation24_spill] sm:$0xff] }
 0x21b   : > { %v3038_v32 = vadd.f32 %v3037_v49, %v3007_v12  ;;  %v3870_v27 = vpop.f32.mrf.mxu1  ;;  %v2274_v53 = vadd.f32 %v5968_v47, %v5967_v9  ;;  %v2480_v51 = vadd.f32 %v5969_v55, %v2276_v19  ;;  %v5974_v12 = vld [vmem:[#allocation48_spill] sm:$0xff] }
 0x21c   : > { %2943 = vst [vmem:[%s5541_s10 + $0xb0] sm:$0xff] %v2911_v39  ;;  %v2909_v46 = vadd.f32 %v2842_v23, %v2699_v14  ;;  %v2702_v15 = vadd.f32 %v3870_v27, %v2476_v63  ;;  %v3907_v8 = vpop.f32.mrf.mxu0  ;;  %v2970_v10 = vadd.f32 %v2969_v2, %v2907_v18  ;;  %v2277_v49 = vadd.f32 %v5974_v12, %v5973_v40  ;;  %v5976_v27 = vld [vmem:[#allocation29_spill] sm:$0xff] }
 0x21d   : > { %v3039_v25 = vadd.f32 %v3038_v32, %v3008_v17  ;;  %v2635_v31 = vpop.f32.mrf.mxu1  ;;  %v2478_v63 = vadd.f32 %v5972_v57, %v2274_v53  ;;  %v3013_v24 = vmul.f32 %v2911_v39, %v2911_v39  ;;  %v5975_v32 = vld [vmem:[#allocation43_spill] sm:$0xff]  ;;  %v5982_v53 = vld [vmem:[#allocation49_spill] sm:$0xff] }
 0x21e   : > { %2941 = vst [vmem:[%s5541_s10 + $0xa0] sm:$0xff] %v2909_v46  ;;  %v2912_v56 = vadd.f32 %v3904_v33, %v2702_v15  ;;  %v2700_v58 = vadd.f32 %v2635_v31, %v2474_v30  ;;  %v2858_v11 = vpop.f32.mrf.mxu0  ;;  %v2971_v7 = vadd.f32 %v2970_v10, %v2908_v0  ;;  %v3011_v62 = vmul.f32 %v2909_v46, %v2909_v46 }
 0x21f   : > { %v3040_v37 = vadd.f32 %v3039_v25, %v3009_v36  ;;  %v3873_v54 = vpop.f32.mrf.mxu1  ;;  %v2279_v0 = vadd.f32 %v5971_v22, %v5970_v1  ;;  %v2280_v30 = vadd.f32 %v5977_v38, %v5976_v27  ;;  %v2481_v19 = vadd.f32 %v5978_v20, %v2277_v49  ;;  %v5979_v36 = vld [vmem:[#allocation32_spill] sm:$0xff] }
 0x220   : > { %2944 = vst [vmem:[%s5541_s10 + $0xb8] sm:$0xff] %v2912_v56  ;;  %v2910_v18 = vadd.f32 %v2845_v42, %v2700_v58  ;;  %v2705_v16 = vadd.f32 %v3873_v54, %v2479_v45  ;;  %v3908_v21 = vpop.f32.mrf.mxu0  ;;  %v2972_v23 = vadd.f32 %v2971_v7, %v2909_v46  ;;  %v3014_v43 = vmul.f32 %v2912_v56, %v2912_v56 }
 0x221   : > { %v3041_v28 = vadd.f32 %v3040_v37, %v3010_v34  ;;  %v2648_v61 = vpop.f32.mrf.mxu1  ;;  %v2483_v2 = vadd.f32 %v5975_v32, %v2279_v0  ;;  %v5981_v34 = vld [vmem:[#allocation47_spill] sm:$0xff] }
 0x222   : > { %2942 = vst [vmem:[%s5541_s10 + $0xa8] sm:$0xff] %v2910_v18  ;;  %v3012_v6 = vmul.f32 %v2910_v18, %v2910_v18  ;;  %v2915_v52 = vadd.f32 %v3907_v8, %v2705_v16  ;;  %v2703_v60 = vadd.f32 %v2648_v61, %v2477_v4  ;;  %v2861_v3 = vpop.f32.mrf.mxu0  ;;  %v2973_v5 = vadd.f32 %v2972_v23, %v2910_v18 }
 0x223   : > { %v3042_v41 = vadd.f32 %v3041_v28, %v3011_v62  ;;  %v3874_v33 = vpop.f32.mrf.mxu1  ;;  %v2484_v37 = vadd.f32 %v5981_v34, %v2280_v30 }
 0x224   : > { %2947 = vst [vmem:[%s5541_s10 + $0xd0] sm:$0xff] %v2915_v52  ;;  %v2913_v59 = vadd.f32 %v2858_v11, %v2703_v60  ;;  %v2706_v48 = vadd.f32 %v3874_v33, %v2480_v51  ;;  %v3911_v26 = vpop.f32.mrf.mxu0  ;;  %v2974_v17 = vadd.f32 %v2973_v5, %v2911_v39  ;;  %v5980_v39 = vld [vmem:[#allocation51_spill] sm:$0xff]  ;;  %v3017_v55 = vmul.f32 %v2915_v52, %v2915_v52 }
 0x225   : > { %v3043_v14 = vadd.f32 %v3042_v41, %v3012_v6  ;;  %v2651_v42 = vpop.f32.mrf.mxu1  ;;  %v2278_v10 = vadd.f32 %v5980_v39, %v5979_v36 }
 0x226   : > { %2945 = vst [vmem:[%s5541_s10 + $0xc0] sm:$0xff] %v2913_v59  ;;  %v2916_v44 = vadd.f32 %v3908_v21, %v2706_v48  ;;  %v2704_v29 = vadd.f32 %v2651_v42, %v2478_v63  ;;  %v2975_v15 = vadd.f32 %v2974_v17, %v2912_v56  ;;  %v2874_v35 = vpop.f32.mrf.mxu0  ;;  %v3015_v45 = vmul.f32 %v2913_v59, %v2913_v59 }
 0x227   : > { %v3044_v46 = vadd.f32 %v3043_v14, %v3013_v24  ;;  %v3877_v8 = vpop.f32.mrf.mxu1  ;;  %v2482_v18 = vadd.f32 %v5982_v53, %v2278_v10 }
 0x228   : > { %2948 = vst [vmem:[%s5541_s10 + $0xd8] sm:$0xff] %v2916_v44  ;;  %v2914_v25 = vadd.f32 %v2861_v3, %v2704_v29  ;;  %v2709_v31 = vadd.f32 %v3877_v8, %v2483_v2  ;;  %v2976_v50 = vadd.f32 %v2975_v15, %v2913_v59  ;;  %v3912_v47 = vpop.f32.mrf.mxu0  ;;  %v3018_v1 = vmul.f32 %v2916_v44, %v2916_v44 }
 0x229   : > { %v3045_v58 = vadd.f32 %v3044_v46, %v3014_v43  ;;  %v2664_v11 = vpop.f32.mrf.mxu1 }
 0x22a   : > { %2946 = vst [vmem:[%s5541_s10 + $0xc8] sm:$0xff] %v2914_v25  ;;  %v3016_v56 = vmul.f32 %v2914_v25, %v2914_v25  ;;  %v2919_v7 = vadd.f32 %v3911_v26, %v2709_v31  ;;  %v2707_v54 = vadd.f32 %v2664_v11, %v2481_v19  ;;  %v2977_v4 = vadd.f32 %v2976_v50, %v2914_v25  ;;  %v2877_v6 = vpop.f32.mrf.mxu0 }
 0x22b   : > { %v3046_v13 = vadd.f32 %v3045_v58, %v3015_v45  ;;  %v3878_v9 = vpop.f32.mrf.mxu1 }
 0x22c   : > { %2951 = vst [vmem:[%s5541_s10 + $0xf0] sm:$0xff] %v2919_v7  ;;  %v2917_v16 = vadd.f32 %v2874_v35, %v2707_v54  ;;  %v2710_v21 = vadd.f32 %v3878_v9, %v2484_v37  ;;  %v2978_v51 = vadd.f32 %v2977_v4, %v2915_v52 }
 0x22d   : > { %v3047_v23 = vadd.f32 %v3046_v13, %v3016_v56  ;;  %v2667_v62 = vpop.f32.mrf.mxu1 }
 0x22e   : > { %2949 = vst [vmem:[%s5541_s10 + $0xe0] sm:$0xff] %v2917_v16  ;;  %v2920_v28 = vadd.f32 %v3912_v47, %v2710_v21  ;;  %v2708_v61 = vadd.f32 %v2667_v62, %v2482_v18  ;;  %v2979_v0 = vadd.f32 %v2978_v51, %v2916_v44  ;;  %v3019_v3 = vmul.f32 %v2917_v16, %v2917_v16 }
 0x22f   : > { %v3048_v22 = vadd.f32 %v3047_v23, %v3017_v55 }
 0x230   : > { %2952 = vst [vmem:[%s5541_s10 + $0xf8] sm:$0xff] %v2920_v28  ;;  %v2918_v52 = vadd.f32 %v2877_v6, %v2708_v61  ;;  %v2980_v60 = vadd.f32 %v2979_v0, %v2917_v16 }
 0x231   : > { %v3049_v41 = vadd.f32 %v3048_v22, %v3018_v1 }
 0x232   : > { %2950 = vst [vmem:[%s5541_s10 + $0xe8] sm:$0xff] %v2918_v52  ;;  %v3020_v5 = vmul.f32 %v2918_v52, %v2918_v52  ;;  %v2981_v57 = vadd.f32 %v2980_v60, %v2918_v52 }
 0x233   : > { %v3050_v33 = vadd.f32 %v3049_v41, %v3019_v3 }
 0x234   : > { %4008 = shalt.err (!%p4005_p3)
}
 0x235   : > { %s4009_s5 = scalar_lea.hbm %s5658_s22, 4096  ;;  %s4013_s9 = scalar_lea.hbm %s5774_s2, 8192 }
 0x236   : > { %p4010_p4 = scmp.ne.s32.totalorder %s5658_s22, %s4009_s5  ;;  %p4014_p9 = scmp.lt.s32.totalorder %s5658_s22, %s5774_s2 }
 0x237   : > { %p4015_p10 = scmp.lt.s32.totalorder %s4013_s9, %s4009_s5 }
 0x238   : > { %p4011_p7 = pnand %p4010_p4, %p4183_p5 }
 0x239   : > { %p4016_p11 = por %p4015_p10, %p4014_p9 }
 0x23a   : > { %p4012_p8 = pneg %p4011_p7 }
 0x23c   : > { %p4017_p12 = pnand %p4016_p11, %p4012_p8 }
 0x23e   : > { %4020 = shalt.err (!%p4017_p12)
}
 0x23f   : > { %s4114_s13 = smov 128   ;;  %s4115_s14 = smov 8   ;;  %v3021_v63 = vmul.f32 %v2919_v7, %v2919_v7  ;;  %v2982_v40 = vadd.f32 %v2981_v57, %v2919_v7  ;;  %v3051_v12 = vadd.f32 %v3050_v33, %v3020_v5  ;;  %v3022_v49 = vmul.f32 %v2920_v28, %v2920_v28 }
 0x240   : > { %3926 = dma.vmem_to_hbm [thread:$0]  (%p4183_p5), %s5660_s12, 4096, %s5658_s22, %s3062_s23, %s4114_s13, %s4114_s13, %s4115_s14  }
 0x241   : > { %v2983_v59 = vadd.f32 %v2982_v40, %v2920_v28  ;;  %v3052_v48 = vadd.f32 %v3051_v12, %v3021_v63  ;;  %s3066_s27 = sand.u32 1, %s4164_s19   ;;  %s3449_s12 = sshll.u32 %s4164_s19, 4 }
 0x242   : > { %s200_s22 = scalar_lea.vmem [#allocation4], %s5523_s8  ;;  %s206_s28 = scalar_lea.vmem [#allocation6], %s5523_s8 }
 0x243   : > { %v2984_v26 = vrot.slane %v2983_v59, 4  ;;  %v3053_v24 = vadd.f32 %v3052_v48, %v3022_v49  ;;  %s3099_s23 = sshll.u32 %s200_s22, 4  ;;  %s3112_s29 = sshll.u32 %s206_s28, 4  ;;  %s5698_s23 = int_to_ptr.vmem [resolvable:$true] %s3099_s23  ;;  %s5705_s29 = int_to_ptr.vmem [resolvable:$true] %s3112_s29 }
 0x244   : > { %s5696_s6 = scalar_lea.hbm %s5775_s3, %s3449_s12  ;;  %s5703_s9 = scalar_lea.hbm %s5776_s4, %s3449_s12 }
 0x245   : > { %v3054_v17 = vrot.slane %v3053_v24, 4  ;;  %v2985_v14 = vadd.f32 %v2984_v26, %v2983_v59  ;;  %s5707_s10 = scalar_lea.sflag [#allocation5], %s3066_s27  ;;  %s4021_s11 = scalar_lea.vmem %s5698_s23, 16 }
 0x246   : > { %p4022_p13 = scmp.ne.s32.totalorder %s5698_s23, %s4021_s11  ;;  %s4116_s13 = smov [#allocation4]  }
 0x247   : > { %v2986_v42 = vrot.slane %v2985_v14, 2  ;;  %v3055_v32 = vadd.f32 %v3054_v17, %v3053_v24  ;;  %s4025_s14 = sshll.u32 %s4116_s13, 4  ;;  %s4026_s14 = int_to_ptr.vmem [resolvable:$false] %s4025_s14 }
 0x248   : > { %p4023_p0 = pnand %p4022_p13, %p4183_p5  ;;  %s4027_s30 = scalar_lea.vmem %s4026_s14, 32 }
 0x249   : > { %v2987_v2 = vadd.f32 %v2986_v42, %v2985_v14  ;;  %v3056_v27 = vrot.slane %v3055_v32, 2  ;;  %p4028_p2 = scmp.lt.s32.totalorder %s5698_s23, %s4026_s14  ;;  %p4029_p3 = scmp.lt.s32.totalorder %s4027_s30, %s4021_s11 }
 0x24a   : > { %p4024_p1 = pneg %p4023_p0 }
 0x24b   : > { %v2988_v38 = vrot.slane %v2987_v2, 1  ;;  %v3057_v30 = vadd.f32 %v3056_v27, %v3055_v32  ;;  %p4030_p4 = por %p4029_p3, %p4028_p2 }
 0x24d   : > { %v2989_v44 = vadd.f32 %v2988_v38, %v2987_v2  ;;  %v3058_v29 = vrot.slane %v3057_v30, 1  ;;  %p4031_p7 = pnand %p4030_p4, %p4024_p1 }
 0x24f   : > { %2990 = vst [vmem:[%s200_s22] sm:$0x1] %v2989_v44  ;;  %v3059_v43 = vadd.f32 %v3058_v29, %v3057_v30 }
 0x250   : > { %4034 = shalt.err (!%p4031_p7)
}
 0x251   : > { %s4035_s27 = scalar_lea.hbm %s5696_s6, 16  ;;  %s4039_s5 = scalar_lea.hbm %s5775_s3, 32 }
 0x252   : > { %p4036_p8 = scmp.ne.s32.totalorder %s5696_s6, %s4035_s27  ;;  %p4040_p11 = scmp.lt.s32.totalorder %s5696_s6, %s5775_s3 }
 0x253   : > { %p4041_p12 = scmp.lt.s32.totalorder %s4039_s5, %s4035_s27 }
 0x254   : > { %p4037_p9 = pnand %p4036_p8, %p4183_p5 }
 0x255   : > { %p4042_p13 = por %p4041_p12, %p4040_p11 }
 0x256   : > { %p4038_p10 = pneg %p4037_p9 }
 0x258   : > { %p4043_p0 = pnand %p4042_p13, %p4038_p10 }
 0x25a   : > { %4046 = shalt.err (!%p4043_p0)
}
 0x25b   : > { %3927 = dma.vmem_to_hbm [thread:$0]  (%p4183_p5), %s5698_s23, 16, %s5696_s6, %s5707_s10   ;;  %3060 = vst [vmem:[%s206_s28] sm:$0x1] %v3059_v43 }
 0x25c   : > { %s4047_s11 = scalar_lea.vmem %s5705_s29, 16  ;;  %s4117_s13 = smov [#allocation6]  }
 0x25d   : > { %p4048_p1 = scmp.ne.s32.totalorder %s5705_s29, %s4047_s11  ;;  %s4051_s14 = sshll.u32 %s4117_s13, 4  ;;  %s4052_s14 = int_to_ptr.vmem [resolvable:$false] %s4051_s14 }
 0x25e   : > { %s4053_s30 = scalar_lea.vmem %s4052_s14, 32  ;;  %p4054_p4 = scmp.lt.s32.totalorder %s5705_s29, %s4052_s14 }
 0x25f   : > { %p4049_p2 = pnand %p4048_p1, %p4183_p5  ;;  %p4055_p7 = scmp.lt.s32.totalorder %s4053_s30, %s4047_s11 }
 0x261   : > { %p4050_p3 = pneg %p4049_p2  ;;  %p4056_p8 = por %p4055_p7, %p4054_p4 }
 0x263   : > { %p4057_p9 = pnand %p4056_p8, %p4050_p3 }
 0x265   : > { %4060 = shalt.err (!%p4057_p9)
}
 0x266   : > { %s4061_s8 = scalar_lea.hbm %s5703_s9, 16  ;;  %s4065_s6 = scalar_lea.hbm %s5776_s4, 32 }
 0x267   : > { %p4062_p10 = scmp.ne.s32.totalorder %s5703_s9, %s4061_s8  ;;  %p4066_p13 = scmp.lt.s32.totalorder %s5703_s9, %s5776_s4 }
 0x268   : > { %p4067_p0 = scmp.lt.s32.totalorder %s4065_s6, %s4061_s8 }
 0x269   : > { %p4063_p11 = pnand %p4062_p10, %p4183_p5 }
 0x26a   : > { %p4068_p1 = por %p4067_p0, %p4066_p13 }
 0x26b   : > { %p4064_p12 = pneg %p4063_p11 }
 0x26d   : > { %p4069_p2 = pnand %p4068_p1, %p4064_p12 }
 0x26f   : > { %4072 = shalt.err (!%p4069_p2)
}
 0x270   : > { %3928 = dma.vmem_to_hbm [thread:$0]  (%p4183_p5), %s5705_s29, 16, %s5703_s9, %s5707_s10  }
 0x271 PF: > { %p3942_p3 = scmp.ge.s32.totalorder %s4111_s18, 2  ;;  %s3124_s22 = sand.u32 1, %s4099_s15  }
 0x272   : > { %s3125_s5 = scalar_lea.sflag [#allocation3], %s3124_s22 }
 0x273   : > { %p3933_p4 = pnand %p3942_p3, %p4187_p6 }
 0x275   : > { %p3934_p7 = pneg %p3933_p4 }
 0x277   : > { %4090 = dma.done.wait (%p3934_p7), %s3125_s5, 4096  }
 0x278   : > { %4092 = vsyncadd (%p3934_p7), %s3125_s5, 4294963200  ;;  %s3133_s19 = sand.u32 1, %s3224_s20  }
 0x279   : > { %s3134_s25 = scalar_lea.sflag [#allocation5], %s3133_s19 }
 0x27a   : > { %4094 = dma.done.wait (%p3934_p7), %s3134_s25, 32  }
 0x27b   : > { %4096 = vsyncadd (%p3934_p7), %s3134_s25, 4294967264  ;;  %p18_p5 = scmp.ge.s32.totalorder %s4168_s21, 4   ;;  %s5983_s15 = smov %s4103_s16 }
 0x27c   : > { %s5984_s16 = smov %s4107_s17  ;;  %s5985_s17 = smov %s4181_s24 }
 0x27d   : > { %s5986_s18 = smov %s4168_s21  ;;  %20 = sbr.rel (!%p18_p5) target bundleno = 5 (0x5), region = 95 }
 0x282   :  { %3146 = vsyncpa [#allocation3], 1 }
 0x283   :  { %3148 = vsyncpa [#allocation3 + $0x1], 1 }
 0x284   :  { %3149 = vsyncpa [#allocation5], 1 }
 0x285   :  { %3151 = vsyncpa [#allocation5 + $0x1], 1 }

</bundles_post_ra>
